<compile_context>
chip_gen: v7x
topology: tpu7x:2x2x1
jax: 0.10.0
libtpu: 0.0.40
codegen_flags: <defaults>
</compile_context>

<pallas_src>
import functools

import jax
import jax.numpy as jnp
from jax.experimental import pallas as pl
from jax.experimental.pallas import tpu as pltpu


def _round_up(v, m):
    return (v + m - 1) // m * m


def _choose_c_block(c_pad, h_pad, w_pad, h_out, w_out, itemsize,
                    budget_bytes=36 * 1024 * 1024):
    """Largest multiple-of-128 channel block dividing c_pad whose per-step VMEM
    footprint (double-buffered in/out tiles + f32 accumulator) fits the budget."""
    groups = c_pad // 128

    def footprint(cb):
        return (2 * h_pad * w_pad * cb * itemsize      # double-buffered input tile
                + 2 * h_out * w_out * cb * itemsize    # double-buffered output tile
                + h_out * w_out * cb * 4)              # f32 accumulator temporaries

    best = 128
    for d in range(1, groups + 1):
        if groups % d == 0 and footprint(128 * d) <= budget_bytes:
            best = 128 * d
    # TODO(synk): if even a 128-channel block exceeds the budget (very large spatial
    # extents), the grid should additionally split H; not needed at MixNet-scale shapes.
    return best, footprint(best)


def _dwconv_kernel(ksize, stride, h_out, w_out, x_ref, w_ref, s_ref, b_ref, o_ref):
    # x_ref: (1, H+2p, W+2p, C_blk)  spatially pre-padded activations (channels-last, VMEM)
    # w_ref: (k*k, C_blk) f32        one dense lane-vector of weights per tap (VMEM)
    # s_ref, b_ref: (1, C_blk) f32   per-channel affine (VMEM)
    # o_ref: (1, H_out, W_out, C_blk)
    cb = o_ref.shape[-1]
    acc = jnp.zeros((h_out, w_out, cb), jnp.float32)
    for kh in range(ksize):                          # static unroll over the k*k taps
        for kw in range(ksize):
            if stride == 1:
                tap = x_ref[0, pl.ds(kh, h_out), pl.ds(kw, w_out), :]
            else:
                # Strided reads land on H (row addressing) and W (sublanes) only;
                # the lane axis (channels) stays contiguous.
                tap = x_ref[0, pl.ds(kh, h_out, stride), pl.ds(kw, w_out, stride), :]
            w_row = w_ref[pl.ds(kh * ksize + kw, 1), :]          # (1, C_blk), broadcast FMA
            # astype is a no-op for the module's f32 activations.
            acc = acc + tap.astype(jnp.float32) * w_row
    y = acc * s_ref[...] + b_ref[...]
    o_ref[0] = y.astype(o_ref.dtype)


def depthwise_conv2d(x, weight, scale, bias, *, stride=1):
    """x: (N, C, H, W) NCHW.  weight: (C, 1, k, k) torch depthwise layout.
    scale/bias: (C,).  Returns (N, C, H_out, W_out) in x.dtype."""
    n, c, h, w = x.shape
    ksize = weight.shape[-1]
    pad = (ksize - 1) // 2
    h_out = (h + 2 * pad - ksize) // stride + 1
    w_out = (w + 2 * pad - ksize) // stride + 1

    c_pad = _round_up(c, 128)                 # channels onto the 128-wide lane axis
    h_pad = h + 2 * pad
    w_pad = w + 2 * pad

    itemsize = jnp.dtype(x.dtype).itemsize
    c_blk, vmem_need = _choose_c_block(c_pad, h_pad, w_pad, h_out, w_out, itemsize)
    n_cblocks = c_pad // c_blk

    # Layout plumbing (one fused XLA pass): NCHW -> NHWC, zero-pad spatially by `pad`
    # and pad channels up to c_pad.  The kernel then needs no padded scratch at all.
    x_nhwc = jnp.transpose(x, (0, 2, 3, 1))
    x_nhwc = jnp.pad(x_nhwc, ((0, 0), (pad, pad), (pad, pad), (0, c_pad - c)))

    # Weights as (k*k, C_pad) f32: one lane-dense row per tap.  Padded channels get
    # zero weight/scale/bias so their (discarded) outputs are well-defined zeros.
    w_taps = jnp.transpose(weight.reshape(c, ksize * ksize), (1, 0)).astype(jnp.float32)
    w_taps = jnp.pad(w_taps, ((0, 0), (0, c_pad - c)))
    scale_v = jnp.pad(scale.reshape(1, c).astype(jnp.float32), ((0, 0), (0, c_pad - c)))
    bias_v = jnp.pad(bias.reshape(1, c).astype(jnp.float32), ((0, 0), (0, c_pad - c)))

    kernel = functools.partial(_dwconv_kernel, ksize, stride, h_out, w_out)

    vmem_limit = int(min(max(vmem_need + (4 << 20), 32 << 20), 100 << 20))

    out_nhwc = pl.pallas_call(
        kernel,
        out_shape=jax.ShapeDtypeStruct((n, h_out, w_out, c_pad), x.dtype),
        grid=(n, n_cblocks),
        in_specs=[
            pl.BlockSpec((1, h_pad, w_pad, c_blk), lambda i, j: (i, 0, 0, j)),
            pl.BlockSpec((ksize * ksize, c_blk), lambda i, j: (0, j)),
            pl.BlockSpec((1, c_blk), lambda i, j: (0, j)),
            pl.BlockSpec((1, c_blk), lambda i, j: (0, j)),
        ],
        out_specs=pl.BlockSpec((1, h_out, w_out, c_blk), lambda i, j: (i, 0, 0, j)),
        compiler_params=pltpu.CompilerParams(
            dimension_semantics=("parallel", "parallel"),
            vmem_limit_bytes=vmem_limit,
        ),
    )(x_nhwc, w_taps, scale_v, bias_v)

    # Drop channel padding, back to NCHW to match the module's I/O contract.
    return jnp.transpose(out_nhwc[..., :c], (0, 3, 1, 2))


def _reference(x, weight, scale, bias, *, stride=1):
    """Pure-JAX reference mirroring the PyTorch forward (for correctness check)."""
    c = x.shape[1]
    ksize = weight.shape[-1]
    pad = (ksize - 1) // 2
    y = jax.lax.conv_general_dilated(
        x.astype(jnp.float32), weight.astype(jnp.float32),
        window_strides=(stride, stride),
        padding=((pad, pad), (pad, pad)),
        dimension_numbers=("NCHW", "OIHW", "NCHW"),
        feature_group_count=c,
        precision=jax.lax.Precision.HIGHEST)
    y = y * scale.reshape(1, c, 1, 1) + bias.reshape(1, c, 1, 1)
    return y.astype(x.dtype)


if __name__ == "__main__":
    def run_case(key, n, c, h, w, ksize, stride):
        kx, kw_, ks, kb = jax.random.split(key, 4)
        x = jax.random.normal(kx, (n, c, h, w), dtype=jnp.float32)
        # Torch depthwise conv weight layout: (C, 1, k, k).
        weight = jax.random.normal(kw_, (c, 1, ksize, ksize), dtype=jnp.float32) * 0.5
        # Module __init__ sets scale=ones, bias=zeros; perturb deterministically so the
        # affine path is actually exercised.
        scale = 1.0 + 0.1 * jax.random.normal(ks, (c,), dtype=jnp.float32)
        bias = 0.1 * jax.random.normal(kb, (c,), dtype=jnp.float32)

        out = depthwise_conv2d(x, weight, scale, bias, stride=stride)
        out = jax.block_until_ready(out)

        ref = _reference(x, weight, scale, bias, stride=stride)
        assert out.shape == ref.shape and out.dtype == x.dtype
        err = jnp.max(jnp.abs(out.astype(jnp.float32) - ref.astype(jnp.float32)))
        assert jnp.allclose(out, ref, atol=1e-5, rtol=1e-5), \
            f"mismatch vs reference, max abs err={err}"

    key = jax.random.PRNGKey(0)
    k1, k2, k3 = jax.random.split(key, 3)
    # Small shapes consistent with the module: N=2, in_channels=4, H=W=16, k=3, stride=1.
    run_case(k1, n=2, c=4, h=16, w=16, ksize=3, stride=1)
    # 5x5 kernel (MixNet mixes kernel sizes).
    run_case(k2, n=1, c=16, h=12, w=12, ksize=5, stride=1)
    # Channel count that is neither tiny nor a multiple of 128 (exercises channel padding).
    run_case(k3, n=1, c=130, h=8, w=8, ksize=3, stride=1)

    print("KERNEL_OK")
</pallas_src>

<mosaic_0001>
module attributes {stable_mosaic.version = 11 : i64} {
  func.func @_dwconv_kernel(%arg0: i32, %arg1: i32, %arg2: memref<1x18x18x128xf32, #tpu.memory_space<vmem>>, %arg3: memref<9x128xf32, #tpu.memory_space<vmem>>, %arg4: memref<1x128xf32, #tpu.memory_space<vmem>>, %arg5: memref<1x128xf32, #tpu.memory_space<vmem>>, %arg6: memref<1x16x16x128xf32, #tpu.memory_space<vmem>>) attributes {dimension_semantics = [#tpu.dimension_semantics<parallel>, #tpu.dimension_semantics<parallel>], iteration_bounds = array<i64: 2, 1>, scalar_prefetch = 0 : i64, scratch_operands = 0 : i64, tpu.core_type = #tpu.core_type<tc>, window_params = [{transform_indices = @transform_0, window_bounds = array<i64: 1, 18, 18, 128>}, {transform_indices = @transform_1, window_bounds = array<i64: 9, 128>}, {transform_indices = @transform_2, window_bounds = array<i64: 1, 128>}, {transform_indices = @transform_3, window_bounds = array<i64: 1, 128>}, {transform_indices = @transform_4, window_bounds = array<i64: 1, 16, 16, 128>}]} {
    %cst = arith.constant 0.000000e+00 : f32
    %0 = vector.broadcast %cst : f32 to vector<16x16x128xf32>
    %c0 = arith.constant 0 : index
    %c0_0 = arith.constant 0 : index
    %c0_1 = arith.constant 0 : index
    %c0_2 = arith.constant 0 : index
    %1 = vector.load %arg2[%c0, %c0_0, %c0_1, %c0_2] : memref<1x18x18x128xf32, #tpu.memory_space<vmem>>, vector<1x16x16x128xf32>
    %2 = vector.shape_cast %1 : vector<1x16x16x128xf32> to vector<16x16x128xf32>
    %c0_3 = arith.constant 0 : index
    %c0_4 = arith.constant 0 : index
    %3 = vector.load %arg3[%c0_3, %c0_4] : memref<9x128xf32, #tpu.memory_space<vmem>>, vector<1x128xf32>
    %4 = vector.shape_cast %3 : vector<1x128xf32> to vector<1x1x128xf32>
    %5 = vector.broadcast %4 : vector<1x1x128xf32> to vector<16x16x128xf32>
    %6 = arith.mulf %2, %5 : vector<16x16x128xf32>
    %7 = arith.addf %0, %6 : vector<16x16x128xf32>
    %c0_5 = arith.constant 0 : index
    %c0_6 = arith.constant 0 : index
    %c1 = arith.constant 1 : index
    %c0_7 = arith.constant 0 : index
    %8 = vector.load %arg2[%c0_5, %c0_6, %c1, %c0_7] : memref<1x18x18x128xf32, #tpu.memory_space<vmem>>, vector<1x16x16x128xf32>
    %9 = vector.shape_cast %8 : vector<1x16x16x128xf32> to vector<16x16x128xf32>
    %c1_8 = arith.constant 1 : index
    %c0_9 = arith.constant 0 : index
    %10 = vector.load %arg3[%c1_8, %c0_9] : memref<9x128xf32, #tpu.memory_space<vmem>>, vector<1x128xf32>
    %11 = vector.shape_cast %10 : vector<1x128xf32> to vector<1x1x128xf32>
    %12 = vector.broadcast %11 : vector<1x1x128xf32> to vector<16x16x128xf32>
    %13 = arith.mulf %9, %12 : vector<16x16x128xf32>
    %14 = arith.addf %7, %13 : vector<16x16x128xf32>
    %c0_10 = arith.constant 0 : index
    %c0_11 = arith.constant 0 : index
    %c2 = arith.constant 2 : index
    %c0_12 = arith.constant 0 : index
    %15 = vector.load %arg2[%c0_10, %c0_11, %c2, %c0_12] : memref<1x18x18x128xf32, #tpu.memory_space<vmem>>, vector<1x16x16x128xf32>
    %16 = vector.shape_cast %15 : vector<1x16x16x128xf32> to vector<16x16x128xf32>
    %c2_13 = arith.constant 2 : index
    %c0_14 = arith.constant 0 : index
    %17 = vector.load %arg3[%c2_13, %c0_14] : memref<9x128xf32, #tpu.memory_space<vmem>>, vector<1x128xf32>
    %18 = vector.shape_cast %17 : vector<1x128xf32> to vector<1x1x128xf32>
    %19 = vector.broadcast %18 : vector<1x1x128xf32> to vector<16x16x128xf32>
    %20 = arith.mulf %16, %19 : vector<16x16x128xf32>
    %21 = arith.addf %14, %20 : vector<16x16x128xf32>
    %c0_15 = arith.constant 0 : index
    %c1_16 = arith.constant 1 : index
    %c0_17 = arith.constant 0 : index
    %c0_18 = arith.constant 0 : index
    %22 = vector.load %arg2[%c0_15, %c1_16, %c0_17, %c0_18] : memref<1x18x18x128xf32, #tpu.memory_space<vmem>>, vector<1x16x16x128xf32>
    %23 = vector.shape_cast %22 : vector<1x16x16x128xf32> to vector<16x16x128xf32>
    %c3 = arith.constant 3 : index
    %c0_19 = arith.constant 0 : index
    %24 = vector.load %arg3[%c3, %c0_19] : memref<9x128xf32, #tpu.memory_space<vmem>>, vector<1x128xf32>
    %25 = vector.shape_cast %24 : vector<1x128xf32> to vector<1x1x128xf32>
    %26 = vector.broadcast %25 : vector<1x1x128xf32> to vector<16x16x128xf32>
    %27 = arith.mulf %23, %26 : vector<16x16x128xf32>
    %28 = arith.addf %21, %27 : vector<16x16x128xf32>
    %c0_20 = arith.constant 0 : index
    %c1_21 = arith.constant 1 : index
    %c1_22 = arith.constant 1 : index
    %c0_23 = arith.constant 0 : index
    %29 = vector.load %arg2[%c0_20, %c1_21, %c1_22, %c0_23] : memref<1x18x18x128xf32, #tpu.memory_space<vmem>>, vector<1x16x16x128xf32>
    %30 = vector.shape_cast %29 : vector<1x16x16x128xf32> to vector<16x16x128xf32>
    %c4 = arith.constant 4 : index
    %c0_24 = arith.constant 0 : index
    %31 = vector.load %arg3[%c4, %c0_24] : memref<9x128xf32, #tpu.memory_space<vmem>>, vector<1x128xf32>
    %32 = vector.shape_cast %31 : vector<1x128xf32> to vector<1x1x128xf32>
    %33 = vector.broadcast %32 : vector<1x1x128xf32> to vector<16x16x128xf32>
    %34 = arith.mulf %30, %33 : vector<16x16x128xf32>
    %35 = arith.addf %28, %34 : vector<16x16x128xf32>
    %c0_25 = arith.constant 0 : index
    %c1_26 = arith.constant 1 : index
    %c2_27 = arith.constant 2 : index
    %c0_28 = arith.constant 0 : index
    %36 = vector.load %arg2[%c0_25, %c1_26, %c2_27, %c0_28] : memref<1x18x18x128xf32, #tpu.memory_space<vmem>>, vector<1x16x16x128xf32>
    %37 = vector.shape_cast %36 : vector<1x16x16x128xf32> to vector<16x16x128xf32>
    %c5 = arith.constant 5 : index
    %c0_29 = arith.constant 0 : index
    %38 = vector.load %arg3[%c5, %c0_29] : memref<9x128xf32, #tpu.memory_space<vmem>>, vector<1x128xf32>
    %39 = vector.shape_cast %38 : vector<1x128xf32> to vector<1x1x128xf32>
    %40 = vector.broadcast %39 : vector<1x1x128xf32> to vector<16x16x128xf32>
    %41 = arith.mulf %37, %40 : vector<16x16x128xf32>
    %42 = arith.addf %35, %41 : vector<16x16x128xf32>
    %c0_30 = arith.constant 0 : index
    %c2_31 = arith.constant 2 : index
    %c0_32 = arith.constant 0 : index
    %c0_33 = arith.constant 0 : index
    %43 = vector.load %arg2[%c0_30, %c2_31, %c0_32, %c0_33] : memref<1x18x18x128xf32, #tpu.memory_space<vmem>>, vector<1x16x16x128xf32>
    %44 = vector.shape_cast %43 : vector<1x16x16x128xf32> to vector<16x16x128xf32>
    %c6 = arith.constant 6 : index
    %c0_34 = arith.constant 0 : index
    %45 = vector.load %arg3[%c6, %c0_34] : memref<9x128xf32, #tpu.memory_space<vmem>>, vector<1x128xf32>
    %46 = vector.shape_cast %45 : vector<1x128xf32> to vector<1x1x128xf32>
    %47 = vector.broadcast %46 : vector<1x1x128xf32> to vector<16x16x128xf32>
    %48 = arith.mulf %44, %47 : vector<16x16x128xf32>
    %49 = arith.addf %42, %48 : vector<16x16x128xf32>
    %c0_35 = arith.constant 0 : index
    %c2_36 = arith.constant 2 : index
    %c1_37 = arith.constant 1 : index
    %c0_38 = arith.constant 0 : index
    %50 = vector.load %arg2[%c0_35, %c2_36, %c1_37, %c0_38] : memref<1x18x18x128xf32, #tpu.memory_space<vmem>>, vector<1x16x16x128xf32>
    %51 = vector.shape_cast %50 : vector<1x16x16x128xf32> to vector<16x16x128xf32>
    %c7 = arith.constant 7 : index
    %c0_39 = arith.constant 0 : index
    %52 = vector.load %arg3[%c7, %c0_39] : memref<9x128xf32, #tpu.memory_space<vmem>>, vector<1x128xf32>
    %53 = vector.shape_cast %52 : vector<1x128xf32> to vector<1x1x128xf32>
    %54 = vector.broadcast %53 : vector<1x1x128xf32> to vector<16x16x128xf32>
    %55 = arith.mulf %51, %54 : vector<16x16x128xf32>
    %56 = arith.addf %49, %55 : vector<16x16x128xf32>
    %c0_40 = arith.constant 0 : index
    %c2_41 = arith.constant 2 : index
    %c2_42 = arith.constant 2 : index
    %c0_43 = arith.constant 0 : index
    %57 = vector.load %arg2[%c0_40, %c2_41, %c2_42, %c0_43] : memref<1x18x18x128xf32, #tpu.memory_space<vmem>>, vector<1x16x16x128xf32>
    %58 = vector.shape_cast %57 : vector<1x16x16x128xf32> to vector<16x16x128xf32>
    %c8 = arith.constant 8 : index
    %c0_44 = arith.constant 0 : index
    %59 = vector.load %arg3[%c8, %c0_44] : memref<9x128xf32, #tpu.memory_space<vmem>>, vector<1x128xf32>
    %60 = vector.shape_cast %59 : vector<1x128xf32> to vector<1x1x128xf32>
    %61 = vector.broadcast %60 : vector<1x1x128xf32> to vector<16x16x128xf32>
    %62 = arith.mulf %58, %61 : vector<16x16x128xf32>
    %63 = arith.addf %56, %62 : vector<16x16x128xf32>
    %c0_45 = arith.constant 0 : index
    %c0_46 = arith.constant 0 : index
    %64 = vector.load %arg4[%c0_45, %c0_46] : memref<1x128xf32, #tpu.memory_space<vmem>>, vector<1x128xf32>
    %65 = vector.shape_cast %64 : vector<1x128xf32> to vector<1x1x128xf32>
    %66 = vector.broadcast %65 : vector<1x1x128xf32> to vector<16x16x128xf32>
    %67 = arith.mulf %63, %66 : vector<16x16x128xf32>
    %c0_47 = arith.constant 0 : index
    %c0_48 = arith.constant 0 : index
    %68 = vector.load %arg5[%c0_47, %c0_48] : memref<1x128xf32, #tpu.memory_space<vmem>>, vector<1x128xf32>
    %69 = vector.shape_cast %68 : vector<1x128xf32> to vector<1x1x128xf32>
    %70 = vector.broadcast %69 : vector<1x1x128xf32> to vector<16x16x128xf32>
    %71 = arith.addf %67, %70 : vector<16x16x128xf32>
    %c0_49 = arith.constant 0 : index
    %c0_50 = arith.constant 0 : index
    %c0_51 = arith.constant 0 : index
    %c0_52 = arith.constant 0 : index
    %72 = vector.load %arg6[%c0_49, %c0_50, %c0_51, %c0_52] : memref<1x16x16x128xf32, #tpu.memory_space<vmem>>, vector<1x16x16x128xf32>
    %73 = vector.shape_cast %72 : vector<1x16x16x128xf32> to vector<16x16x128xf32>
    %74 = vector.shape_cast %71 : vector<16x16x128xf32> to vector<1x16x16x128xf32>
    tpu.vector_store %arg6[%c0_49, %c0_50, %c0_51, %c0_52], %74 {strides = array<i32>} : memref<1x16x16x128xf32, #tpu.memory_space<vmem>>, vector<1x16x16x128xf32>,
    return
  }
  func.func @transform_0(%arg0: i32, %arg1: i32) -> (i32, i32, i32, i32) {
    %c0_i32 = arith.constant 0 : i32
    %c0_i32_0 = arith.constant 0 : i32
    %c0_i32_1 = arith.constant 0 : i32
    return %arg0, %c0_i32, %c0_i32_0, %arg1 : i32, i32, i32, i32
  }
  func.func @transform_1(%arg0: i32, %arg1: i32) -> (i32, i32) {
    %c0_i32 = arith.constant 0 : i32
    %c0_i32_0 = arith.constant 0 : i32
    return %c0_i32, %arg1 : i32, i32
  }
  func.func @transform_2(%arg0: i32, %arg1: i32) -> (i32, i32) {
    %c0_i32 = arith.constant 0 : i32
    %c0_i32_0 = arith.constant 0 : i32
    return %c0_i32, %arg1 : i32, i32
  }
  func.func @transform_3(%arg0: i32, %arg1: i32) -> (i32, i32) {
    %c0_i32 = arith.constant 0 : i32
    %c0_i32_0 = arith.constant 0 : i32
    return %c0_i32, %arg1 : i32, i32
  }
  func.func @transform_4(%arg0: i32, %arg1: i32) -> (i32, i32, i32, i32) {
    %c0_i32 = arith.constant 0 : i32
    %c0_i32_0 = arith.constant 0 : i32
    %c0_i32_1 = arith.constant 0 : i32
    return %arg0, %c0_i32, %c0_i32_0, %arg1 : i32, i32, i32, i32
  }
}

</mosaic_0001>

<bundles_post_ra>
// kernel: tpu_custom_call.1
= control target key start
LH: loop header
LB: loop body
LE: loop exit
PB: predicated region body
PF: predicated region fallthrough
CT: control target
= control target key end

     0   :  { %9 = vsyncpa [#allocation3], 0  ;;  %s2711_s0 = inlined_call_operand.vmem [shape: f32[2,18,18,128], index: 0, kind: input, shape index: {}]   ;;  %s2712_s1 = inlined_call_operand.vmem [shape: f32[9,128], index: 1, kind: input, shape index: {}]   ;;  %s2713_s2 = inlined_call_operand.vmem [shape: f32[1,128], index: 2, kind: input, shape index: {}]   ;;  %s2714_s3 = inlined_call_operand.vmem [shape: f32[1,128], index: 3, kind: input, shape index: {}]   ;;  %s2715_s4 = inlined_call_operand.hbm [shape: f32[2,16,16,128], index: 4, kind: output, shape index: {}]  }
   0x1   :  { %11 = vsyncpa [#allocation3 + $0x1], 0  ;;  %s1815_s15 = smov 0   ;;  %s1817_s16 = smov 0  }
   0x2   :  { %s1819_s17 = smov 0   ;;  %s1821_s18 = smov 0  }
   0x3   :  { %s1823_s19 = smov 0   ;;  %s1825_s20 = smov 0  }
   0x4 LB: > { %s1419_s21 = sadd.s32 4294967295, %s1785_s20   ;;  %s1420_s22 = sadd.s32 4294967294, %s1785_s20   ;;  %s1785_s20 = sphi %s1825_s20, %s17_s20   ;;  %s1781_s19 = sphi %s1823_s19, %s2722_s19   ;;  %s1777_s18 = sphi %s1821_s18, %s2721_s18   ;;  %s1773_s17 = sphi %s1819_s17, %s2720_s17   ;;  %s1769_s16 = sphi %s1817_s16, %s2719_s16   ;;  %s1765_s15 = sphi %s1815_s15, %s2718_s15  }
   0x5   : > { %s29_s23 = sadd.s32 1, %s1781_s19  ;;  %s144_s24 = sadd.s32 1, %s1773_s17 }
   0x6   : > { %p31_p0 = scmp.ge.s32.totalorder %s29_s23, 2  ;;  %p154_p1 = scmp.ne.s32.totalorder %s1773_s17, %s1769_s16 }
   0x7   : > { %p155_p2 = scmp.eq.s32.totalorder %s1419_s21, 1  ;;  %p160_p3 = scmp.ne.s32.totalorder %s1769_s16, %s1765_s15 }
   0x8   : > { %s2724_s23 = smov (%p31_p0, %s29_s23), 0  ;;  %p161_p5 = scmp.eq.s32.totalorder %s1420_s22, 1 }
   0x9   : > { %p1855_p4 = por %p155_p2, %p154_p1  ;;  %s139_s26 = ssub.s32 %s1781_s19, %s2724_s23 }
   0xa   : > { %p1426_p6 = scmp.ge.s32.totalorder %s1785_s20, 1  ;;  %p142_p7 = scmp.eq.s32.totalorder %s139_s26, 0 }
   0xb   : > { %p1862_p8 = por %p161_p5, %p160_p3  ;;  %p209_p9 = scmp.lt.s32.totalorder %s1785_s20, 3 }
   0xc   : > { %s1868_s28 = scalar_select %p142_p7, %s1773_s17, %s144_s24  }
   0xd   : > { %p210_p10 = pnand %p1426_p6, %p209_p9 }
   0xe   : > { %p248_p11 = scmp.lt.s32.totalorder (!%p210_p10), %s1777_s18, 1  ;;  %v1875_v0 = vld [vmem:[%s2712_s1] ss:$0 sm:$0xff] (!%p210_p10)  ;;  %v1880_v1 = vld [vmem:[%s2712_s1 + $0x1] ss:$0 sm:$0xff] (!%p210_p10)  ;;  %s245_s10 = sand.u32 (!%p210_p10), 1, %s1769_s16  }
   0xf   : > { %213 = sbr.rel (%p210_p10) target bundleno = 206 (0xce), region = 36  ;;  %v1885_v2 = vld [vmem:[%s2712_s1 + $0x2] ss:$0 sm:$0xff] (!%p210_p10)  ;;  %v1890_v3 = vld [vmem:[%s2712_s1 + $0x3] ss:$0 sm:$0xff] (!%p210_p10)  ;;  %s1427_s13 = sshll.u32 (!%p210_p10), %s245_s10, 8 }
  0x10   : > { %v1900_v4 = vld [vmem:[%s2712_s1 + $0x4] ss:$0 sm:$0xff] (!%p210_p10)  ;;  %v1905_v5 = vld [vmem:[%s2712_s1 + $0x5] ss:$0 sm:$0xff] (!%p210_p10)  ;;  %v1910_v6 = vld [vmem:[%s2712_s1 + $0x6] ss:$0 sm:$0xff] (!%p210_p10) }
  0x11   : > { %v1923_v15 = vld [vmem:[%s2712_s1 + $0x7] ss:$0 sm:$0xff] (!%p210_p10)  ;;  %v1934_v20 = vld [vmem:[%s2712_s1 + $0x8] ss:$0 sm:$0xff] (!%p210_p10)  ;;  %s2058_s24 = scalar_lea.vmem (!%p210_p10), [#allocation2], %s1427_s13  ;;  %s2665_s26 = scalar_lea.sflag (!%p210_p10), [#allocation3], %s245_s10 }
  0x12   : > { %s1302_s12 = sshll.u32 (!%p210_p10), %s2058_s24, 4  ;;  %s2659_s12 = int_to_ptr.vmem [resolvable:$true] %s1302_s12 }
  0x16   : > { %s249_s29 = scalar_select %p248_p11, %s1777_s18, 1 }
  0x18   : > { %s1638_s30 = smul.u32 432, %s249_s29  ;;  %s1787_s29 = smov [#allocation2]  }
  0x19   : > { %s1711_s5 = sshll.u32 %s1787_s29, 4  ;;  %s1712_s5 = int_to_ptr.vmem [resolvable:$false] %s1711_s5 }
  0x1a   : > { %s1895_s21 = scalar_lea.vmem %s2711_s0, %s1638_s30  ;;  %s1713_s30 = scalar_lea.vmem %s1712_s5, 8192 }
  0x1b   : > { %v266_v7 = vld [vmem:[%s1895_s21] sm:$0xff]  ;;  %v1432_v13 = vld [vmem:[%s1895_s21 + $0x18] sm:$0xff]  ;;  %v1929_v19 = vld [vmem:[%s1895_s21 + $0x30] sm:$0xff]  ;;  %p1714_p1 = scmp.lt.s32.totalorder %s2659_s12, %s1712_s5 }
  0x1c   : > { %v367_v8 = vld [vmem:[%s1895_s21 + $0x1] sm:$0xff]  ;;  %v303_v10 = vmul.f32 %v1875_v0, %v266_v7  ;;  %v1465_v14 = vld [vmem:[%s1895_s21 + $0x19] sm:$0xff]  ;;  %v607_v16 = vmul.f32 %v1890_v3, %v1432_v13  ;;  %v911_v23 = vmul.f32 %v1910_v6, %v1929_v19  ;;  %v368_v25 = vld [vmem:[%s1895_s21 + $0x9] sm:$0xff]  ;;  %v305_v27 = vmul.f32 %v1432_v13, %v1875_v0 }
  0x1d   : > { %v468_v9 = vld [vmem:[%s1895_s21 + $0x2] sm:$0xff]  ;;  %v404_v11 = vmul.f32 %v1880_v1, %v367_v8  ;;  %v708_v17 = vmul.f32 %v1900_v4, %v1465_v14  ;;  %v1498_v18 = vld [vmem:[%s1895_s21 + $0x1a] sm:$0xff]  ;;  %v469_v26 = vld [vmem:[%s1895_s21 + $0xa] sm:$0xff]  ;;  %v405_v31 = vmul.f32 %v1880_v1, %v368_v25  ;;  %v406_v34 = vmul.f32 %v1465_v14, %v1880_v1 }
  0x1e   : > { %v505_v12 = vmul.f32 %v1885_v2, %v468_v9  ;;  %v809_v22 = vmul.f32 %v1905_v5, %v1498_v18  ;;  %v267_v24 = vld [vmem:[%s1895_s21 + $0x8] sm:$0xff]  ;;  %v1564_v28 = vld [vmem:[%s1895_s21 + $0x31] sm:$0xff]  ;;  %v506_v32 = vmul.f32 %v1885_v2, %v469_v26  ;;  %v1433_v33 = vld [vmem:[%s1895_s21 + $0x20] sm:$0xff]  ;;  %v507_v50 = vmul.f32 %v1498_v18, %v1885_v2 }
  0x1f   : > { %v436_v21 = vadd.f32 %v404_v11, %v303_v10  ;;  %v1597_v29 = vld [vmem:[%s1895_s21 + $0x32] sm:$0xff]  ;;  %v304_v30 = vmul.f32 %v1875_v0, %v267_v24  ;;  %v1012_v36 = vmul.f32 %v1923_v15, %v1564_v28  ;;  %v608_v38 = vmul.f32 %v1890_v3, %v1433_v33  ;;  %v1466_v39 = vld [vmem:[%s1895_s21 + $0x21] sm:$0xff]  ;;  %v1983_v62 = vld [vmem:[%s1895_s21 + $0x49] sm:$0xff] }
  0x20   : > { %v1113_v37 = vmul.f32 %v1934_v20, %v1597_v29  ;;  %v1499_v40 = vld [vmem:[%s1895_s21 + $0x22] sm:$0xff]  ;;  %v1956_v41 = vld [vmem:[%s1895_s21 + $0x38] sm:$0xff]  ;;  %v709_v43 = vmul.f32 %v1900_v4, %v1466_v39  ;;  %v438_v49 = vadd.f32 %v406_v34, %v305_v27  ;;  %v609_v51 = vmul.f32 %v1929_v19, %v1890_v3  ;;  %v1986_v63 = vld [vmem:[%s1895_s21 + $0x4a] sm:$0xff] }
  0x21   : > { %v537_v35 = vadd.f32 %v505_v12, %v436_v21  ;;  %v437_v42 = vadd.f32 %v405_v31, %v304_v30  ;;  %v810_v44 = vmul.f32 %v1905_v5, %v1499_v40  ;;  %v912_v45 = vmul.f32 %v1910_v6, %v1956_v41  ;;  %v1963_v47 = vld [vmem:[%s1895_s21 + $0x39] sm:$0xff]  ;;  %v1977_v56 = vld [vmem:[%s1895_s21 + $0x48] sm:$0xff]  ;;  %v2000_v21 = vld [vmem:[%s1895_s21 + $0x50] sm:$0xff] }
  0x22   : > { %v1966_v48 = vld [vmem:[%s1895_s21 + $0x3a] sm:$0xff]  ;;  %v1013_v53 = vmul.f32 %v1923_v15, %v1963_v47  ;;  %v710_v55 = vmul.f32 %v1564_v28, %v1900_v4  ;;  %v539_v58 = vadd.f32 %v507_v50, %v438_v49  ;;  %v811_v59 = vmul.f32 %v1597_v29, %v1905_v5  ;;  %v2008_v31 = vld [vmem:[%s1895_s21 + $0x51] sm:$0xff] }
  0x23   : > { %v639_v46 = vadd.f32 %v607_v16, %v537_v35  ;;  %v538_v52 = vadd.f32 %v506_v32, %v437_v42  ;;  %v1114_v54 = vmul.f32 %v1934_v20, %v1966_v48  ;;  %v913_v60 = vmul.f32 %v1910_v6, %v1977_v56 }
  0x24   : > { %v306_v7 = vmul.f32 %v1433_v33, %v1875_v0  ;;  %v407_v8 = vmul.f32 %v1466_v39, %v1880_v1  ;;  %v508_v9 = vmul.f32 %v1499_v40, %v1885_v2  ;;  %v641_v11 = vadd.f32 %v609_v51, %v539_v58  ;;  %v2019_v39 = vld [vmem:[%s2713_s2] ss:$0 sm:$0xff] }
  0x25   : > { %v740_v57 = vadd.f32 %v708_v17, %v639_v46  ;;  %v640_v61 = vadd.f32 %v608_v38, %v538_v52  ;;  %v1014_v12 = vmul.f32 %v1923_v15, %v1983_v62  ;;  %v1115_v13 = vmul.f32 %v1934_v20, %v1986_v63 }
  0x26   : > { %v439_v16 = vadd.f32 %v407_v8, %v306_v7  ;;  %v610_v17 = vmul.f32 %v1956_v41, %v1890_v3  ;;  %v711_v18 = vmul.f32 %v1963_v47, %v1900_v4  ;;  %v812_v25 = vmul.f32 %v1966_v48, %v1905_v5 }
  0x27   : > { %v841_v10 = vadd.f32 %v809_v22, %v740_v57  ;;  %v741_v14 = vadd.f32 %v709_v43, %v640_v61  ;;  %v742_v22 = vadd.f32 %v710_v55, %v641_v11  ;;  %v914_v26 = vmul.f32 %v1910_v6, %v2000_v21  ;;  %v2022_v43 = vld [vmem:[%s1895_s21 + $0x52] sm:$0xff]  ;;  %v2040_v55 = vld [vmem:[%s1895_s21 + $0x60] sm:$0xff] }
  0x28   : > { %v540_v30 = vadd.f32 %v508_v9, %v439_v16  ;;  %v307_v32 = vmul.f32 %v1929_v19, %v1875_v0  ;;  %v408_v33 = vmul.f32 %v1564_v28, %v1880_v1  ;;  %v1015_v35 = vmul.f32 %v1923_v15, %v2008_v31 }
  0x29   : > { %v943_v24 = vadd.f32 %v911_v23, %v841_v10  ;;  %v842_v27 = vadd.f32 %v810_v44, %v741_v14  ;;  %v843_v34 = vadd.f32 %v811_v59, %v742_v22  ;;  %v509_v38 = vmul.f32 %v1597_v29, %v1885_v2  ;;  %v1601_v22 = vld [vmem:[%s1895_s21 + $0x62] sm:$0xff] }
  0x2a   : > { %v642_v42 = vadd.f32 %v610_v17, %v540_v30  ;;  %v440_v19 = vadd.f32 %v408_v33, %v307_v32  ;;  %v611_v28 = vmul.f32 %v1977_v56, %v1890_v3  ;;  %v1116_v29 = vmul.f32 %v1934_v20, %v2022_v43 }
  0x2b   : > { %v1044_v23 = vadd.f32 %v1012_v36, %v943_v24  ;;  %v944_v40 = vadd.f32 %v912_v45, %v842_v27  ;;  %v945_v44 = vadd.f32 %v913_v60, %v843_v34  ;;  %v712_v46 = vmul.f32 %v1983_v62, %v1900_v4  ;;  %v2035_v45 = vld [vmem:[%s2714_s3] ss:$0 sm:$0xff] }
  0x2c   : > { %v743_v50 = vadd.f32 %v711_v18, %v642_v42  ;;  %v541_v51 = vadd.f32 %v509_v38, %v440_v19  ;;  %v813_v52 = vmul.f32 %v1986_v63, %v1905_v5  ;;  %v915_v58 = vmul.f32 %v1910_v6, %v2040_v55 }
  0x2d   : > { %v1145_v36 = vadd.f32 %v1113_v37, %v1044_v23  ;;  %v1045_v49 = vadd.f32 %v1013_v53, %v944_v40  ;;  %v1046_v57 = vadd.f32 %v1014_v12, %v945_v44  ;;  %v308_v59 = vmul.f32 %v1956_v41, %v1875_v0  ;;  %v1569_v44 = vld [vmem:[%s1895_s21 + $0x69] sm:$0xff] }
  0x2e   : > { %v844_v61 = vadd.f32 %v812_v25, %v743_v50  ;;  %v643_v53 = vadd.f32 %v611_v28, %v541_v51  ;;  %v409_v7 = vmul.f32 %v1963_v47, %v1880_v1  ;;  %v510_v10 = vmul.f32 %v1966_v48, %v1885_v2 }
  0x2f   : > { %v1184_v37 = vmul.f32 %v2019_v39, %v1145_v36  ;;  %v1146_v60 = vadd.f32 %v1114_v54, %v1045_v49  ;;  %v1147_v9 = vadd.f32 %v1115_v13, %v1046_v57  ;;  %v612_v11 = vmul.f32 %v2000_v21, %v1890_v3  ;;  %v2056_v54 = vld [vmem:[%s1895_s21 + $0x61] sm:$0xff] }
  0x30   : > { %v946_v14 = vadd.f32 %v914_v26, %v844_v61  ;;  %v744_v41 = vadd.f32 %v712_v46, %v643_v53  ;;  %v441_v16 = vadd.f32 %v409_v7, %v308_v59  ;;  %v1016_v48 = vmul.f32 %v1923_v15, %v2056_v54  ;;  %v2101_v61 = vld [vmem:[%s1895_s21 + $0x79] sm:$0xff] }
  0x31   : > { %v1223_v8 = vadd.f32 %v2035_v45, %v1184_v37  ;;  %v1185_v12 = vmul.f32 %v2019_v39, %v1146_v60  ;;  %v1186_v47 = vmul.f32 %v2019_v39, %v1147_v9  ;;  %v713_v13 = vmul.f32 %v2008_v31, %v1900_v4 }
  0x32   : > { %v1047_v18 = vadd.f32 %v1015_v35, %v946_v14  ;;  %v845_v24 = vadd.f32 %v813_v52, %v744_v41  ;;  %v542_v25 = vadd.f32 %v510_v10, %v441_v16  ;;  %v1117_v27 = vmul.f32 %v1934_v20, %v1601_v22  ;;  %v1536_v35 = vld [vmem:[%s1895_s21 + $0x68] sm:$0xff] }
  0x33   : > { %1255 = vst [vmem:[%s2058_s24] sm:$0xff] %v1223_v8  ;;  %v1224_v17 = vadd.f32 %v2035_v45, %v1185_v12  ;;  %v1225_v26 = vadd.f32 %v2035_v45, %v1186_v47  ;;  %v814_v30 = vmul.f32 %v2022_v43, %v1905_v5  ;;  %v309_v32 = vmul.f32 %v1977_v56, %v1875_v0 }
  0x34   : > { %v1148_v33 = vadd.f32 %v1116_v29, %v1047_v18  ;;  %v947_v23 = vadd.f32 %v915_v58, %v845_v24  ;;  %v644_v34 = vadd.f32 %v612_v11, %v542_v25  ;;  %v410_v38 = vmul.f32 %v1983_v62, %v1880_v1  ;;  %v1602_v29 = vld [vmem:[%s1895_s21 + $0x6a] sm:$0xff]  ;;  %v2095_v58 = vld [vmem:[%s1895_s21 + $0x78] sm:$0xff]  ;;  %v2120_v18 = vld [vmem:[%s1895_s21 + $0x80] sm:$0xff] }
  0x35   : > { %1256 = vst [vmem:[%s2058_s24 + $0x8] sm:$0xff] %v1224_v17  ;;  %1257 = vst [vmem:[%s2058_s24 + $0x10] sm:$0xff] %v1225_v26  ;;  %v916_v40 = vmul.f32 %v1910_v6, %v1536_v35  ;;  %v511_v42 = vmul.f32 %v1986_v63, %v1885_v2  ;;  %v613_v19 = vmul.f32 %v2040_v55, %v1890_v3  ;;  %v1603_v11 = vld [vmem:[%s1895_s21 + $0x7a] sm:$0xff] }
  0x36   : > { %v1187_v56 = vmul.f32 %v2019_v39, %v1148_v33  ;;  %v1048_v28 = vadd.f32 %v1016_v48, %v947_v23  ;;  %v745_v36 = vadd.f32 %v713_v13, %v644_v34  ;;  %v442_v46 = vadd.f32 %v410_v38, %v309_v32  ;;  %v2123_v24 = vld [vmem:[%s1895_s21 + $0x81] sm:$0xff] }
  0x37   : > { %v1017_v62 = vmul.f32 %v1923_v15, %v1569_v44  ;;  %v1118_v49 = vmul.f32 %v1934_v20, %v1602_v29  ;;  %v714_v63 = vmul.f32 %v2056_v54, %v1900_v4  ;;  %v310_v50 = vmul.f32 %v2000_v21, %v1875_v0  ;;  %v1604_v33 = vld [vmem:[%s1895_s21 + $0x82] sm:$0xff] }
  0x38   : > { %v1226_v51 = vadd.f32 %v2035_v45, %v1187_v56  ;;  %v1149_v52 = vadd.f32 %v1117_v27, %v1048_v28  ;;  %v846_v37 = vadd.f32 %v814_v30, %v745_v36  ;;  %v543_v57 = vadd.f32 %v511_v42, %v442_v46  ;;  %v2142_v36 = vld [vmem:[%s1895_s21 + $0x90] sm:$0xff] }
  0x39   : > { %v815_v59 = vmul.f32 %v1601_v22, %v1905_v5  ;;  %v917_v60 = vmul.f32 %v1910_v6, %v2095_v58  ;;  %v411_v53 = vmul.f32 %v2008_v31, %v1880_v1  ;;  %v512_v21 = vmul.f32 %v2022_v43, %v1885_v2 }
  0x3a   : > { %1258 = vst [vmem:[%s2058_s24 + $0x18] sm:$0xff] %v1226_v51  ;;  %v1188_v7 = vmul.f32 %v2019_v39, %v1149_v52  ;;  %v948_v8 = vadd.f32 %v916_v40, %v846_v37  ;;  %v645_v9 = vadd.f32 %v613_v19, %v543_v57  ;;  %v1018_v10 = vmul.f32 %v1923_v15, %v2101_v61  ;;  %v2154_v57 = vld [vmem:[%s1895_s21 + $0x92] sm:$0xff] }
  0x3b   : > { %v1119_v12 = vmul.f32 %v1934_v20, %v1603_v11  ;;  %v443_v14 = vadd.f32 %v411_v53, %v310_v50  ;;  %v614_v31 = vmul.f32 %v1536_v35, %v1890_v3  ;;  %v715_v41 = vmul.f32 %v1569_v44, %v1900_v4 }
  0x3c   : > { %v1227_v43 = vadd.f32 %v2035_v45, %v1188_v7  ;;  %v1049_v16 = vadd.f32 %v1017_v62, %v948_v8  ;;  %v746_v47 = vadd.f32 %v714_v63, %v645_v9  ;;  %v311_v48 = vmul.f32 %v2040_v55, %v1875_v0 }
  0x3d   : > { %v544_v13 = vadd.f32 %v512_v21, %v443_v14  ;;  %v816_v17 = vmul.f32 %v1602_v29, %v1905_v5  ;;  %v412_v25 = vmul.f32 %v2056_v54, %v1880_v1  ;;  %v513_v26 = vmul.f32 %v1601_v22, %v1885_v2 }
  0x3e   : > { %1259 = vst [vmem:[%s2058_s24 + $0x20] sm:$0xff] %v1227_v43  ;;  %v1150_v27 = vadd.f32 %v1118_v49, %v1049_v16  ;;  %v847_v30 = vadd.f32 %v815_v59, %v746_v47  ;;  %v918_v32 = vmul.f32 %v1910_v6, %v2120_v18  ;;  %v1019_v55 = vmul.f32 %v1923_v15, %v2123_v24 }
  0x3f   : > { %v646_v23 = vadd.f32 %v614_v31, %v544_v13  ;;  %v1120_v34 = vmul.f32 %v1934_v20, %v1604_v33  ;;  %v444_v38 = vadd.f32 %v412_v25, %v311_v48  ;;  %v615_v54 = vmul.f32 %v2095_v58, %v1890_v3  ;;  %v2170_v31 = vld [vmem:[%s1895_s21 + $0x98] sm:$0xff] }
  0x40   : > { %v1189_v22 = vmul.f32 %v2019_v39, %v1150_v27  ;;  %v949_v40 = vadd.f32 %v917_v60, %v847_v30  ;;  %v716_v42 = vmul.f32 %v2101_v61, %v1900_v4  ;;  %v312_v19 = vmul.f32 %v1536_v35, %v1875_v0  ;;  %v2151_v35 = vld [vmem:[%s1895_s21 + $0x91] sm:$0xff] }
  0x41   : > { %v747_v56 = vadd.f32 %v715_v41, %v646_v23  ;;  %v545_v28 = vadd.f32 %v513_v26, %v444_v38  ;;  %v413_v46 = vmul.f32 %v1569_v44, %v1880_v1  ;;  %v514_v62 = vmul.f32 %v1602_v29, %v1885_v2  ;;  %v2184_v26 = vld [vmem:[%s1895_s21 + $0x9a] sm:$0xff] }
  0x42   : > { %v1228_v49 = vadd.f32 %v2035_v45, %v1189_v22  ;;  %v1050_v63 = vadd.f32 %v1018_v10, %v949_v40  ;;  %v817_v50 = vmul.f32 %v1603_v11, %v1905_v5  ;;  %v919_v51 = vmul.f32 %v1910_v6, %v2142_v36 }
  0x43   : > { %v848_v52 = vadd.f32 %v816_v17, %v747_v56  ;;  %v647_v37 = vadd.f32 %v615_v54, %v545_v28  ;;  %v445_v59 = vadd.f32 %v413_v46, %v312_v19  ;;  %v616_v44 = vmul.f32 %v2120_v18, %v1890_v3  ;;  %v2178_v17 = vld [vmem:[%s1895_s21 + $0x99] sm:$0xff]  ;;  %v2202_v46 = vld [vmem:[%s1895_s21 + $0xa8] sm:$0xff] }
  0x44   : > { %1260 = vst [vmem:[%s2058_s24 + $0x28] sm:$0xff] %v1228_v49  ;;  %v1151_v29 = vadd.f32 %v1119_v12, %v1050_v63  ;;  %v1020_v60 = vmul.f32 %v1923_v15, %v2151_v35  ;;  %v1121_v53 = vmul.f32 %v1934_v20, %v2154_v57  ;;  %v717_v21 = vmul.f32 %v2123_v24, %v1900_v4 }
  0x45   : > { %v950_v7 = vadd.f32 %v918_v32, %v848_v52  ;;  %v748_v8 = vadd.f32 %v716_v42, %v647_v37  ;;  %v546_v9 = vadd.f32 %v514_v62, %v445_v59  ;;  %v313_v10 = vmul.f32 %v2095_v58, %v1875_v0 }
  0x46   : > { %v1190_v14 = vmul.f32 %v2019_v39, %v1151_v29  ;;  %v818_v12 = vmul.f32 %v1604_v33, %v1905_v5  ;;  %v414_v41 = vmul.f32 %v2101_v61, %v1880_v1  ;;  %v515_v43 = vmul.f32 %v1603_v11, %v1885_v2 }
  0x47   : > { %v1051_v16 = vadd.f32 %v1019_v55, %v950_v7  ;;  %v849_v47 = vadd.f32 %v817_v50, %v748_v8  ;;  %v648_v48 = vadd.f32 %v616_v44, %v546_v9  ;;  %v920_v13 = vmul.f32 %v1910_v6, %v2170_v31  ;;  %v1607_v7 = vld [vmem:[%s1895_s21 + $0xaa] sm:$0xff] }
  0x48   : > { %v1229_v58 = vadd.f32 %v2035_v45, %v1190_v14  ;;  %v1021_v25 = vmul.f32 %v1923_v15, %v2178_v17  ;;  %v446_v27 = vadd.f32 %v414_v41, %v313_v10  ;;  %v617_v61 = vmul.f32 %v2142_v36, %v1890_v3  ;;  %v2221_v9 = vld [vmem:[%s1895_s21 + $0xb0] sm:$0xff] }
  0x49   : > { %v1152_v11 = vadd.f32 %v1120_v34, %v1051_v16  ;;  %v951_v30 = vadd.f32 %v919_v51, %v849_v47  ;;  %v749_v32 = vadd.f32 %v717_v21, %v648_v48  ;;  %v1122_v55 = vmul.f32 %v1934_v20, %v2184_v26  ;;  %v1575_v48 = vld [vmem:[%s1895_s21 + $0xb1] sm:$0xff] }
  0x4a   : > { %1261 = vst [vmem:[%s2058_s24 + $0x30] sm:$0xff] %v1229_v58  ;;  %v547_v23 = vadd.f32 %v515_v43, %v446_v27  ;;  %v718_v38 = vmul.f32 %v2151_v35, %v1900_v4  ;;  %v314_v54 = vmul.f32 %v2120_v18, %v1875_v0  ;;  %v415_v22 = vmul.f32 %v2123_v24, %v1880_v1 }
  0x4b   : > { %v1191_v40 = vmul.f32 %v2019_v39, %v1152_v11  ;;  %v1052_v34 = vadd.f32 %v1020_v60, %v951_v30  ;;  %v850_v42 = vadd.f32 %v818_v12, %v749_v32  ;;  %v516_v19 = vmul.f32 %v1604_v33, %v1885_v2  ;;  %v1574_v33 = vld [vmem:[%s1895_s21 + $0xa9] sm:$0xff] }
  0x4c   : > { %v649_v56 = vadd.f32 %v617_v61, %v547_v23  ;;  %v819_v28 = vmul.f32 %v2154_v57, %v1905_v5  ;;  %v447_v62 = vadd.f32 %v415_v22, %v314_v54  ;;  %v618_v18 = vmul.f32 %v2170_v31, %v1890_v3  ;;  %v2245_v54 = vld [vmem:[%s1895_s21 + $0xc0] sm:$0xff] }
  0x4d   : > { %v1230_v24 = vadd.f32 %v2035_v45, %v1191_v40  ;;  %v1153_v49 = vadd.f32 %v1121_v53, %v1052_v34  ;;  %v952_v63 = vadd.f32 %v920_v13, %v850_v42  ;;  %v921_v50 = vmul.f32 %v1910_v6, %v2202_v46  ;;  %v1608_v13 = vld [vmem:[%s1895_s21 + $0xb2] sm:$0xff] }
  0x4e   : > { %v750_v51 = vadd.f32 %v718_v38, %v649_v56  ;;  %v1022_v52 = vmul.f32 %v1923_v15, %v1574_v33  ;;  %v548_v37 = vadd.f32 %v516_v19, %v447_v62  ;;  %v719_v59 = vmul.f32 %v2178_v17, %v1900_v4 }
  0x4f   : > { %1262 = vst [vmem:[%s2058_s24 + $0x38] sm:$0xff] %v1230_v24  ;;  %v1192_v44 = vmul.f32 %v2019_v39, %v1153_v49  ;;  %v1053_v29 = vadd.f32 %v1021_v25, %v952_v63  ;;  %v820_v60 = vmul.f32 %v2184_v26, %v1905_v5  ;;  %v315_v53 = vmul.f32 %v2142_v36, %v1875_v0 }
  0x50   : > { %v851_v21 = vadd.f32 %v819_v28, %v750_v51  ;;  %v650_v8 = vadd.f32 %v618_v18, %v548_v37  ;;  %v416_v10 = vmul.f32 %v2151_v35, %v1880_v1  ;;  %v517_v14 = vmul.f32 %v2154_v57, %v1885_v2  ;;  %v1576_v28 = vld [vmem:[%s1895_s21 + $0xc1] sm:$0xff] }
  0x51   : > { %v1231_v12 = vadd.f32 %v2035_v45, %v1192_v44  ;;  %v1154_v41 = vadd.f32 %v1122_v55, %v1053_v29  ;;  %v1123_v43 = vmul.f32 %v1934_v20, %v1607_v7  ;;  %v922_v36 = vmul.f32 %v1910_v6, %v2221_v9 }
  0x52   : > { %v953_v16 = vadd.f32 %v921_v50, %v851_v21  ;;  %v751_v47 = vadd.f32 %v719_v59, %v650_v8  ;;  %v448_v58 = vadd.f32 %v416_v10, %v315_v53  ;;  %v619_v35 = vmul.f32 %v2202_v46, %v1890_v3  ;;  %v1544_v21 = vld [vmem:[%s1895_s21 + $0xc8] sm:$0xff] }
  0x53   : > { %1263 = vst [vmem:[%s2058_s24 + $0x40] sm:$0xff] %v1231_v12  ;;  %v1193_v57 = vmul.f32 %v2019_v39, %v1154_v41  ;;  %v1023_v25 = vmul.f32 %v1923_v15, %v1575_v48  ;;  %v1124_v27 = vmul.f32 %v1934_v20, %v1608_v13  ;;  %v720_v61 = vmul.f32 %v1574_v33, %v1900_v4  ;;  %v2272_v12 = vld [vmem:[%s1895_s21 + $0xca] sm:$0xff] }
  0x54   : > { %v1054_v11 = vadd.f32 %v1022_v52, %v953_v16  ;;  %v852_v30 = vadd.f32 %v820_v60, %v751_v47  ;;  %v549_v32 = vadd.f32 %v517_v14, %v448_v58  ;;  %v316_v55 = vmul.f32 %v2170_v31, %v1875_v0  ;;  %v1609_v31 = vld [vmem:[%s1895_s21 + $0xc2] sm:$0xff] }
  0x55   : > { %v1232_v23 = vadd.f32 %v2035_v45, %v1193_v57  ;;  %v821_v38 = vmul.f32 %v1607_v7, %v1905_v5  ;;  %v417_v22 = vmul.f32 %v2178_v17, %v1880_v1  ;;  %v518_v40 = vmul.f32 %v2184_v26, %v1885_v2  ;;  %v1577_v14 = vld [vmem:[%s1895_s21 + $0xc9] sm:$0xff] }
  0x56   : > { %v1155_v34 = vadd.f32 %v1123_v43, %v1054_v11  ;;  %v954_v42 = vadd.f32 %v922_v36, %v852_v30  ;;  %v651_v19 = vadd.f32 %v619_v35, %v549_v32  ;;  %v923_v56 = vmul.f32 %v1910_v6, %v2245_v54 }
  0x57   : > { %1264 = vst [vmem:[%s2058_s24 + $0x48] sm:$0xff] %v1232_v23  ;;  %v1024_v62 = vmul.f32 %v1923_v15, %v1576_v28  ;;  %v1125_v18 = vmul.f32 %v1934_v20, %v1609_v31  ;;  %v449_v24 = vadd.f32 %v417_v22, %v316_v55  ;;  %v620_v17 = vmul.f32 %v2221_v9, %v1890_v3 }
  0x58   : > { %v1194_v26 = vmul.f32 %v2019_v39, %v1155_v34  ;;  %v1055_v49 = vadd.f32 %v1023_v25, %v954_v42  ;;  %v752_v63 = vadd.f32 %v720_v61, %v651_v19  ;;  %v721_v50 = vmul.f32 %v1575_v48, %v1900_v4 }
  0x59   : > { %v550_v51 = vadd.f32 %v518_v40, %v449_v24  ;;  %v317_v52 = vmul.f32 %v2202_v46, %v1875_v0  ;;  %v418_v37 = vmul.f32 %v1574_v33, %v1880_v1  ;;  %v519_v59 = vmul.f32 %v1607_v7, %v1885_v2  ;;  %v1611_v40 = vld [vmem:[%s1895_s21 + $0xda] sm:$0xff] }
  0x5a   : > { %v1233_v44 = vadd.f32 %v2035_v45, %v1194_v26  ;;  %v1156_v29 = vadd.f32 %v1124_v27, %v1055_v49  ;;  %v853_v60 = vadd.f32 %v821_v38, %v752_v63  ;;  %v822_v53 = vmul.f32 %v1608_v13, %v1905_v5  ;;  %v2286_v27 = vld [vmem:[%s1895_s21 + $0xd8] sm:$0xff] }
  0x5b   : > { %v652_v8 = vadd.f32 %v620_v17, %v550_v51  ;;  %v924_v10 = vmul.f32 %v1910_v6, %v1544_v21  ;;  %v450_v41 = vadd.f32 %v418_v37, %v317_v52  ;;  %v621_v46 = vmul.f32 %v2245_v54, %v1890_v3  ;;  %v1578_v38 = vld [vmem:[%s1895_s21 + $0xd9] sm:$0xff] }
  0x5c   : > { %1265 = vst [vmem:[%s2058_s24 + $0x50] sm:$0xff] %v1233_v44  ;;  %v1195_v33 = vmul.f32 %v2019_v39, %v1156_v29  ;;  %v955_v7 = vadd.f32 %v923_v56, %v853_v60  ;;  %v1025_v43 = vmul.f32 %v1923_v15, %v1577_v14  ;;  %v1126_v36 = vmul.f32 %v1934_v20, %v2272_v12  ;;  %v1546_v37 = vld [vmem:[%s1895_s21 + $0xe0] sm:$0xff] }
  0x5d   : > { %v753_v16 = vadd.f32 %v721_v50, %v652_v8  ;;  %v551_v47 = vadd.f32 %v519_v59, %v450_v41  ;;  %v722_v58 = vmul.f32 %v1576_v28, %v1900_v4  ;;  %v318_v35 = vmul.f32 %v2221_v9, %v1875_v0  ;;  %v1579_v59 = vld [vmem:[%s1895_s21 + $0xe1] sm:$0xff] }
  0x5e   : > { %v1234_v57 = vadd.f32 %v2035_v45, %v1195_v33  ;;  %v1056_v25 = vadd.f32 %v1024_v62, %v955_v7  ;;  %v419_v61 = vmul.f32 %v1575_v48, %v1880_v1  ;;  %v520_v11 = vmul.f32 %v1608_v13, %v1885_v2  ;;  %v1612_v8 = vld [vmem:[%s1895_s21 + $0xe2] sm:$0xff] }
  0x5f   : > { %v854_v30 = vadd.f32 %v822_v53, %v753_v16  ;;  %v653_v32 = vadd.f32 %v621_v46, %v551_v47  ;;  %v823_v55 = vmul.f32 %v1609_v31, %v1905_v5  ;;  %v925_v23 = vmul.f32 %v1910_v6, %v2286_v27 }
  0x60   : > { %1266 = vst [vmem:[%s2058_s24 + $0x58] sm:$0xff] %v1234_v57  ;;  %v1157_v22 = vadd.f32 %v1125_v18, %v1056_v25  ;;  %v1026_v9 = vmul.f32 %v1923_v15, %v1578_v38  ;;  %v451_v34 = vadd.f32 %v419_v61, %v318_v35  ;;  %v622_v42 = vmul.f32 %v1544_v21, %v1890_v3  ;;  %v1547_v61 = vld [vmem:[%s1895_s21 + $0xf0] sm:$0xff] }
  0x61   : > { %v956_v48 = vadd.f32 %v924_v10, %v854_v30  ;;  %v754_v13 = vadd.f32 %v722_v58, %v653_v32  ;;  %v1127_v19 = vmul.f32 %v1934_v20, %v1611_v40  ;;  %v723_v56 = vmul.f32 %v1577_v14, %v1900_v4 }
  0x62   : > { %v1196_v62 = vmul.f32 %v2019_v39, %v1157_v22  ;;  %v552_v24 = vadd.f32 %v520_v11, %v451_v34  ;;  %v319_v18 = vmul.f32 %v2245_v54, %v1875_v0  ;;  %v420_v17 = vmul.f32 %v1576_v28, %v1880_v1  ;;  %v1580_v11 = vld [vmem:[%s1895_s21 + $0xf1] sm:$0xff] }
  0x63   : > { %v1057_v26 = vadd.f32 %v1025_v43, %v956_v48  ;;  %v855_v49 = vadd.f32 %v823_v55, %v754_v13  ;;  %v824_v63 = vmul.f32 %v2272_v12, %v1905_v5  ;;  %v521_v50 = vmul.f32 %v1609_v31, %v1885_v2  ;;  %v1613_v22 = vld [vmem:[%s1895_s21 + $0xf2] sm:$0xff] }
  0x64   : > { %v1235_v51 = vadd.f32 %v2035_v45, %v1196_v62  ;;  %v654_v52 = vadd.f32 %v622_v42, %v552_v24  ;;  %v452_v44 = vadd.f32 %v420_v17, %v319_v18  ;;  %v623_v54 = vmul.f32 %v2286_v27, %v1890_v3 }
  0x65   : > { %v1158_v29 = vadd.f32 %v1126_v36, %v1057_v26  ;;  %v957_v60 = vadd.f32 %v925_v23, %v855_v49  ;;  %v926_v28 = vmul.f32 %v1910_v6, %v1546_v37  ;;  %v1027_v53 = vmul.f32 %v1923_v15, %v1579_v59 }
  0x66   : > { %1267 = vst [vmem:[%s2058_s24 + $0x60] sm:$0xff] %v1235_v51  ;;  %v755_v31 = vadd.f32 %v723_v56, %v654_v52  ;;  %v1128_v10 = vmul.f32 %v1934_v20, %v1612_v8  ;;  %v553_v41 = vadd.f32 %v521_v50, %v452_v44  ;;  %v724_v46 = vmul.f32 %v1578_v38, %v1900_v4  ;;  %v1581_v50 = vld [vmem:[%s1895_s21 + $0xf9] sm:$0xff] }
  0x67   : > { %v1197_v33 = vmul.f32 %v2019_v39, %v1158_v29  ;;  %v1058_v7 = vadd.f32 %v1026_v9, %v957_v60  ;;  %v320_v43 = vmul.f32 %v1544_v21, %v1875_v0  ;;  %v421_v36 = vmul.f32 %v1577_v14, %v1880_v1 }
  0x68   : > { %v856_v16 = vadd.f32 %v824_v63, %v755_v31  ;;  %v655_v47 = vadd.f32 %v623_v54, %v553_v41  ;;  %v825_v58 = vmul.f32 %v1611_v40, %v1905_v5  ;;  %v522_v35 = vmul.f32 %v2272_v12, %v1885_v2  ;;  %v1548_v63 = vld [vmem:[%s1895_s21 + $0xf8] sm:$0xff] }
  0x69   : > { %v1236_v57 = vadd.f32 %v2035_v45, %v1197_v33  ;;  %v1159_v25 = vadd.f32 %v1127_v19, %v1058_v7  ;;  %v453_v30 = vadd.f32 %v421_v36, %v320_v43  ;;  %v624_v32 = vmul.f32 %v1546_v37, %v1890_v3  ;;  %v1614_v33 = vld [vmem:[%s1895_s21 + $0xfa] sm:$0xff] }
  0x6a   : > { %v958_v21 = vadd.f32 %v926_v28, %v856_v16  ;;  %v756_v55 = vadd.f32 %v724_v46, %v655_v47  ;;  %v927_v14 = vmul.f32 %v1910_v6, %v1547_v61  ;;  %v1028_v23 = vmul.f32 %v1923_v15, %v1580_v11  ;;  %v1549_v47 = vld [vmem:[%s1895_s21 + $0x108] sm:$0xff] }
  0x6b   : > { %1268 = vst [vmem:[%s2058_s24 + $0x68] sm:$0xff] %v1236_v57  ;;  %v1198_v12 = vmul.f32 %v2019_v39, %v1159_v25  ;;  %v1129_v9 = vmul.f32 %v1934_v20, %v1613_v22  ;;  %v554_v34 = vadd.f32 %v522_v35, %v453_v30  ;;  %v725_v42 = vmul.f32 %v1579_v59, %v1900_v4 }
  0x6c   : > { %v1059_v48 = vadd.f32 %v1027_v53, %v958_v21  ;;  %v857_v13 = vadd.f32 %v825_v58, %v756_v55  ;;  %v321_v19 = vmul.f32 %v2286_v27, %v1875_v0  ;;  %v422_v56 = vmul.f32 %v1578_v38, %v1880_v1  ;;  %v1582_v58 = vld [vmem:[%s1895_s21 + $0x109] sm:$0xff] }
  0x6d   : > { %v1237_v62 = vadd.f32 %v2035_v45, %v1198_v12  ;;  %v656_v24 = vadd.f32 %v624_v32, %v554_v34  ;;  %v826_v18 = vmul.f32 %v1612_v8, %v1905_v5  ;;  %v523_v17 = vmul.f32 %v1611_v40, %v1885_v2  ;;  %v1615_v12 = vld [vmem:[%s1895_s21 + $0x10a] sm:$0xff] }
  0x6e   : > { %v1160_v26 = vadd.f32 %v1128_v10, %v1059_v48  ;;  %v959_v49 = vadd.f32 %v927_v14, %v857_v13  ;;  %v454_v51 = vadd.f32 %v422_v56, %v321_v19  ;;  %v625_v52 = vmul.f32 %v1547_v61, %v1890_v3  ;;  %v1550_v56 = vld [vmem:[%s1895_s21 + $0x110] sm:$0xff] }
  0x6f   : > { %1269 = vst [vmem:[%s2058_s24 + $0x70] sm:$0xff] %v1237_v62  ;;  %v757_v44 = vadd.f32 %v725_v42, %v656_v24  ;;  %v928_v27 = vmul.f32 %v1910_v6, %v1548_v63  ;;  %v1029_v38 = vmul.f32 %v1923_v15, %v1581_v50  ;;  %v726_v60 = vmul.f32 %v1580_v11, %v1900_v4 }
  0x70   : > { %v1199_v54 = vmul.f32 %v2019_v39, %v1160_v26  ;;  %v1060_v29 = vadd.f32 %v1028_v23, %v959_v49  ;;  %v555_v40 = vadd.f32 %v523_v17, %v454_v51  ;;  %v322_v53 = vmul.f32 %v1546_v37, %v1875_v0 }
  0x71   : > { %v858_v28 = vadd.f32 %v826_v18, %v757_v44  ;;  %v423_v31 = vmul.f32 %v1579_v59, %v1880_v1  ;;  %v524_v10 = vmul.f32 %v1612_v8, %v1885_v2  ;;  %v827_v43 = vmul.f32 %v1613_v22, %v1905_v5 }
  0x72   : > { %v1238_v41 = vadd.f32 %v2035_v45, %v1199_v54  ;;  %v1161_v46 = vadd.f32 %v1129_v9, %v1060_v29  ;;  %v657_v7 = vadd.f32 %v625_v52, %v555_v40  ;;  %v1130_v16 = vmul.f32 %v1934_v20, %v1614_v33 }
  0x73   : > { %v960_v36 = vadd.f32 %v928_v27, %v858_v28  ;;  %v455_v35 = vadd.f32 %v423_v31, %v322_v53  ;;  %v626_v37 = vmul.f32 %v1548_v63, %v1890_v3  ;;  %v929_v57 = vmul.f32 %v1910_v6, %v1549_v47  ;;  %v1616_v28 = vld [vmem:[%s1895_s21 + $0x112] sm:$0xff]  ;;  %v2389_v31 = vld [vmem:[%s1895_s21 + $0x120] sm:$0xff] }
  0x74   : > { %1270 = vst [vmem:[%s2058_s24 + $0x78] sm:$0xff] %v1238_v41  ;;  %v1200_v59 = vmul.f32 %v2019_v39, %v1161_v46  ;;  %v758_v8 = vadd.f32 %v726_v60, %v657_v7  ;;  %v1030_v25 = vmul.f32 %v1923_v15, %v1582_v58  ;;  %v727_v21 = vmul.f32 %v1581_v50, %v1900_v4 }
  0x75   : > { %v1061_v30 = vadd.f32 %v1029_v38, %v960_v36  ;;  %v556_v32 = vadd.f32 %v524_v10, %v455_v35  ;;  %v323_v55 = vmul.f32 %v1547_v61, %v1875_v0  ;;  %v424_v9 = vmul.f32 %v1580_v11, %v1880_v1  ;;  %v2375_v61 = vld [vmem:[%s1895_s21 + $0x111] sm:$0xff]  ;;  %v2392_v10 = vld [vmem:[%s1895_s21 + $0x121] sm:$0xff] }
  0x76   : > { %v1239_v14 = vadd.f32 %v2035_v45, %v1200_v59  ;;  %v859_v23 = vadd.f32 %v827_v43, %v758_v8  ;;  %v525_v34 = vmul.f32 %v1613_v22, %v1885_v2  ;;  %v1131_v48 = vmul.f32 %v1934_v20, %v1615_v12 }
  0x77   : > { %v1162_v42 = vadd.f32 %v1130_v16, %v1061_v30  ;;  %v658_v13 = vadd.f32 %v626_v37, %v556_v32  ;;  %v828_v19 = vmul.f32 %v1614_v33, %v1905_v5  ;;  %v930_v24 = vmul.f32 %v1910_v6, %v1550_v56 }
  0x78   : > { %1271 = vst [vmem:[%s2058_s24 + $0x80] sm:$0xff] %v1239_v14  ;;  %v961_v62 = vadd.f32 %v929_v57, %v859_v23  ;;  %v456_v18 = vadd.f32 %v424_v9, %v323_v55  ;;  %v627_v17 = vmul.f32 %v1549_v47, %v1890_v3  ;;  %v1031_v26 = vmul.f32 %v1923_v15, %v2375_v61  ;;  %v2412_v14 = vld [vmem:[%s1895_s21 + $0x128] sm:$0xff] }
  0x79   : > { %v1201_v11 = vmul.f32 %v2019_v39, %v1162_v42  ;;  %v759_v22 = vadd.f32 %v727_v21, %v658_v13  ;;  %v728_v49 = vmul.f32 %v1582_v58, %v1900_v4  ;;  %v324_v44 = vmul.f32 %v1548_v63, %v1875_v0  ;;  %v2438_v42 = vld [vmem:[%s2712_s1 + $0x4] ss:$0 sm:$0xff]  ;;  %v2445_v13 = vld [vmem:[%s2712_s1] ss:$0 sm:$0xff] }
  0x7a   : > { %v1062_v51 = vadd.f32 %v1030_v25, %v961_v62  ;;  %v557_v52 = vadd.f32 %v525_v34, %v456_v18  ;;  %v425_v27 = vmul.f32 %v1581_v50, %v1880_v1  ;;  %v829_v29 = vmul.f32 %v1615_v12, %v1905_v5  ;;  %v1617_v25 = vld [vmem:[%s1895_s21 + $0x122] sm:$0xff]  ;;  %v2452_v18 = vld [vmem:[%s2712_s1 + $0x1] ss:$0 sm:$0xff] }
  0x7b   : > { %v1240_v38 = vadd.f32 %v2035_v45, %v1201_v11  ;;  %v860_v54 = vadd.f32 %v828_v19, %v759_v22  ;;  %v526_v40 = vmul.f32 %v1614_v33, %v1885_v2  ;;  %v628_v46 = vmul.f32 %v1550_v56, %v1890_v3  ;;  %v2459_v11 = vld [vmem:[%s2712_s1 + $0x2] ss:$0 sm:$0xff] }
  0x7c   : > { %v1163_v60 = vadd.f32 %v1131_v48, %v1062_v51  ;;  %v659_v53 = vadd.f32 %v627_v17, %v557_v52  ;;  %v457_v41 = vadd.f32 %v425_v27, %v324_v44  ;;  %v1132_v50 = vmul.f32 %v1934_v20, %v1616_v28  ;;  %v2467_v51 = vld [vmem:[%s2712_s1 + $0x5] ss:$0 sm:$0xff]  ;;  %v1553_v27 = vld [vmem:[%s1895_s21 + $0x138] sm:$0xff] }
  0x7d   : > { %1272 = vst [vmem:[%s2058_s24 + $0x88] sm:$0xff] %v1240_v38  ;;  %v962_v63 = vadd.f32 %v930_v24, %v860_v54  ;;  %v931_v7 = vmul.f32 %v1910_v6, %v2389_v31  ;;  %v1032_v33 = vmul.f32 %v1923_v15, %v2392_v10  ;;  %v729_v3 = vmul.f32 %v2375_v61, %v1900_v4  ;;  %v2415_v4 = vld [vmem:[%s1895_s21 + $0x129] sm:$0xff]  ;;  %v1586_v38 = vld [vmem:[%s1895_s21 + $0x139] sm:$0xff] }
  0x7e   : > { %v1202_v43 = vmul.f32 %v2019_v39, %v1163_v60  ;;  %v760_v36 = vadd.f32 %v728_v49, %v659_v53  ;;  %v558_v16 = vadd.f32 %v526_v40, %v457_v41  ;;  %v325_v37 = vmul.f32 %v1549_v47, %v1875_v0  ;;  %v2420_v0 = vld [vmem:[%s2712_s1 + $0x3] ss:$0 sm:$0xff]  ;;  %v2428_v47 = vld [vmem:[%s2712_s1 + $0x6] ss:$0 sm:$0xff]  ;;  %v1618_v24 = vld [vmem:[%s1895_s21 + $0x12a] sm:$0xff] }
  0x7f   : > { %v1063_v35 = vadd.f32 %v1031_v26, %v962_v63  ;;  %v426_v59 = vmul.f32 %v1582_v58, %v1880_v1  ;;  %v527_v6 = vmul.f32 %v1615_v12, %v1885_v2  ;;  %v830_v32 = vmul.f32 %v1616_v28, %v1905_v5  ;;  %v2479_v60 = vld [vmem:[%s2712_s1 + $0x7] ss:$0 sm:$0xff]  ;;  %v1619_v63 = vld [vmem:[%s1895_s21 + $0x13a] sm:$0xff] }
  0x80   : > { %v1241_v8 = vadd.f32 %v2035_v45, %v1202_v43  ;;  %v861_v57 = vadd.f32 %v829_v29, %v760_v36  ;;  %v660_v30 = vadd.f32 %v628_v46, %v558_v16  ;;  %v1133_v55 = vmul.f32 %v1934_v20, %v1617_v25  ;;  %v2491_v43 = vld [vmem:[%s2712_s1 + $0x8] ss:$0 sm:$0xff] }
  0x81   : > { %v1164_v21 = vadd.f32 %v1132_v50, %v1063_v35  ;;  %v458_v23 = vadd.f32 %v426_v59, %v325_v37  ;;  %v629_v1 = vmul.f32 %v2420_v0, %v2389_v31  ;;  %v932_v58 = vmul.f32 %v2428_v47, %v2412_v14 }
  0x82   : > { %1273 = vst [vmem:[%s2058_s24 + $0x90] sm:$0xff] %v1241_v8  ;;  %v963_v2 = vadd.f32 %v931_v7, %v861_v57  ;;  %v761_v5 = vadd.f32 %v729_v3, %v660_v30  ;;  %v1033_v12 = vmul.f32 %v1923_v15, %v2415_v4  ;;  %v730_v48 = vmul.f32 %v2438_v42, %v2392_v10  ;;  %v1587_v30 = vld [vmem:[%s1895_s21 + $0x141] sm:$0xff] }
  0x83   : > { %v1203_v9 = vmul.f32 %v2019_v39, %v1164_v21  ;;  %v559_v34 = vadd.f32 %v527_v6, %v458_v23  ;;  %v326_v19 = vmul.f32 %v2445_v13, %v1550_v56  ;;  %v427_v17 = vmul.f32 %v2452_v18, %v2375_v61  ;;  %v1554_v6 = vld [vmem:[%s1895_s21 + $0x140] sm:$0xff] }
  0x84   : > { %v1064_v15 = vadd.f32 %v1032_v33, %v963_v2  ;;  %v862_v62 = vadd.f32 %v830_v32, %v761_v5  ;;  %v528_v56 = vmul.f32 %v2459_v11, %v1616_v28  ;;  %v1134_v26 = vmul.f32 %v1934_v20, %v1618_v24 }
  0x85   : > { %v1242_v22 = vadd.f32 %v2035_v45, %v1203_v9  ;;  %v661_v49 = vadd.f32 %v629_v1, %v559_v34  ;;  %v831_v61 = vmul.f32 %v2467_v51, %v1617_v25  ;;  %v459_v54 = vadd.f32 %v427_v17, %v326_v19  ;;  %v2516_v17 = vld [vmem:[%s1895_s21 + $0x150] sm:$0xff] }
  0x86   : > { %v1165_v52 = vadd.f32 %v1133_v55, %v1064_v15  ;;  %v964_v44 = vadd.f32 %v932_v58, %v862_v62  ;;  %v630_v29 = vmul.f32 %v2420_v0, %v2412_v14  ;;  %v933_v20 = vmul.f32 %v2428_v47, %v1553_v27  ;;  %v1620_v15 = vld [vmem:[%s1895_s21 + $0x142] sm:$0xff] }
  0x87   : > { %1274 = vst [vmem:[%s2058_s24 + $0x98] sm:$0xff] %v1242_v22  ;;  %v762_v40 = vadd.f32 %v730_v48, %v661_v49  ;;  %v1034_v28 = vmul.f32 %v2479_v60, %v1586_v38  ;;  %v731_v53 = vmul.f32 %v2438_v42, %v2415_v4  ;;  %v560_v50 = vadd.f32 %v528_v56, %v459_v54  ;;  %v2519_v56 = vld [vmem:[%s1895_s21 + $0x151] sm:$0xff] }
  0x88   : > { %v1204_v41 = vmul.f32 %v2019_v39, %v1165_v52  ;;  %v1065_v46 = vadd.f32 %v1033_v12, %v964_v44  ;;  %v327_v7 = vmul.f32 %v2445_v13, %v2389_v31  ;;  %v1135_v36 = vmul.f32 %v2491_v43, %v1619_v63 }
  0x89   : > { %v863_v33 = vadd.f32 %v831_v61, %v762_v40  ;;  %v428_v16 = vmul.f32 %v2452_v18, %v2392_v10  ;;  %v529_v3 = vmul.f32 %v2459_v11, %v1617_v25  ;;  %v662_v59 = vadd.f32 %v630_v29, %v560_v50 }
  0x8a   : > { %v1243_v35 = vadd.f32 %v2035_v45, %v1204_v41  ;;  %v1166_v37 = vadd.f32 %v1134_v26, %v1065_v46  ;;  %v832_v31 = vmul.f32 %v2467_v51, %v1618_v24  ;;  %v934_v57 = vmul.f32 %v2428_v47, %v1554_v6  ;;  %v1621_v46 = vld [vmem:[%s1895_s21 + $0x152] sm:$0xff] }
  0x8b   : > { %v965_v8 = vadd.f32 %v933_v20, %v863_v33  ;;  %v460_v32 = vadd.f32 %v428_v16, %v327_v7  ;;  %v631_v21 = vmul.f32 %v2420_v0, %v1553_v27  ;;  %v763_v25 = vadd.f32 %v731_v53, %v662_v59  ;;  %v1589_v16 = vld [vmem:[%s1895_s21 + $0x159] sm:$0xff] }
  0x8c   : > { %1275 = vst [vmem:[%s2058_s24 + $0xa0] sm:$0xff] %v1243_v35  ;;  %v1205_v10 = vmul.f32 %v2019_v39, %v1166_v37  ;;  %v1035_v55 = vmul.f32 %v2479_v60, %v1587_v30  ;;  %v732_v23 = vmul.f32 %v2438_v42, %v1586_v38  ;;  %v328_v5 = vmul.f32 %v2445_v13, %v2412_v14  ;;  %v2547_v37 = vld [vmem:[%s2713_s2] ss:$0 sm:$0xff] }
  0x8d   : > { %v1066_v1 = vadd.f32 %v1034_v28, %v965_v8  ;;  %v561_v2 = vadd.f32 %v529_v3, %v460_v32  ;;  %v429_v58 = vmul.f32 %v2452_v18, %v2415_v4  ;;  %v864_v9 = vadd.f32 %v832_v31, %v763_v25 }
  0x8e   : > { %v1244_v12 = vadd.f32 %v2035_v45, %v1205_v10  ;;  %v833_v34 = vmul.f32 %v2467_v51, %v1619_v63  ;;  %v530_v48 = vmul.f32 %v2459_v11, %v1618_v24  ;;  %v632_v14 = vmul.f32 %v2420_v0, %v1554_v6  ;;  %v1622_v10 = vld [vmem:[%s1895_s21 + $0x15a] sm:$0xff] }
  0x8f   : > { %v1167_v19 = vadd.f32 %v1135_v36, %v1066_v1  ;;  %v663_v62 = vadd.f32 %v631_v21, %v561_v2  ;;  %v461_v22 = vadd.f32 %v429_v58, %v328_v5  ;;  %v966_v4 = vadd.f32 %v934_v57, %v864_v9  ;;  %v1556_v36 = vld [vmem:[%s1895_s21 + $0x158] sm:$0xff]  ;;  %v1557_v9 = vld [vmem:[%s1895_s21 + $0x168] sm:$0xff] }
  0x90   : > { %1276 = vst [vmem:[%s2058_s24 + $0xa8] sm:$0xff] %v1244_v12  ;;  %v1136_v26 = vmul.f32 %v2491_v43, %v1620_v15  ;;  %v935_v49 = vmul.f32 %v2428_v47, %v2516_v17  ;;  %v1036_v24 = vmul.f32 %v2479_v60, %v2519_v56  ;;  %v733_v54 = vmul.f32 %v2438_v42, %v1587_v30 }
  0x91   : > { %v1206_v61 = vmul.f32 %v2019_v39, %v1167_v19  ;;  %v764_v52 = vadd.f32 %v732_v23, %v663_v62  ;;  %v562_v44 = vadd.f32 %v530_v48, %v461_v22  ;;  %v1067_v29 = vadd.f32 %v1035_v55, %v966_v4  ;;  %v2559_v23 = vld [vmem:[%s2714_s3] ss:$0 sm:$0xff] }
  0x92   : > { %v329_v40 = vmul.f32 %v2445_v13, %v1553_v27  ;;  %v430_v20 = vmul.f32 %v2452_v18, %v1586_v38  ;;  %v531_v28 = vmul.f32 %v2459_v11, %v1619_v63  ;;  %v834_v39 = vmul.f32 %v2467_v51, %v1620_v15 }
  0x93   : > { %v1245_v53 = vadd.f32 %v2035_v45, %v1206_v61  ;;  %v865_v41 = vadd.f32 %v833_v34, %v764_v52  ;;  %v664_v50 = vadd.f32 %v632_v14, %v562_v44  ;;  %v1168_v7 = vadd.f32 %v1136_v26, %v1067_v29  ;;  %v1590_v34 = vld [vmem:[%s1895_s21 + $0x169] sm:$0xff] }
  0x94   : > { %v1137_v33 = vmul.f32 %v2491_v43, %v1621_v46  ;;  %v462_v3 = vadd.f32 %v430_v20, %v329_v40  ;;  %v633_v27 = vmul.f32 %v2420_v0, %v2516_v17  ;;  %v936_v45 = vmul.f32 %v2428_v47, %v1556_v36  ;;  %v1623_v26 = vld [vmem:[%s1895_s21 + $0x16a] sm:$0xff] }
  0x95   : > { %1277 = vst [vmem:[%s2058_s24 + $0xb0] sm:$0xff] %v1245_v53  ;;  %v967_v38 = vadd.f32 %v935_v49, %v865_v41  ;;  %v765_v63 = vadd.f32 %v733_v54, %v664_v50  ;;  %v1037_v35 = vmul.f32 %v2479_v60, %v1589_v16  ;;  %v1207_v59 = vmul.f32 %v2547_v37, %v1168_v7  ;;  %v1558_v53 = vld [vmem:[%s1895_s21 + $0x170] sm:$0xff] }
  0x96   : > { %v563_v31 = vadd.f32 %v531_v28, %v462_v3  ;;  %v734_v8 = vmul.f32 %v2438_v42, %v2519_v56  ;;  %v330_v57 = vmul.f32 %v2445_v13, %v1554_v6  ;;  %v431_v25 = vmul.f32 %v2452_v18, %v1587_v30 }
  0x97   : > { %v1068_v32 = vadd.f32 %v1036_v24, %v967_v38  ;;  %v866_v21 = vadd.f32 %v834_v39, %v765_v63  ;;  %v532_v55 = vmul.f32 %v2459_v11, %v1620_v15  ;;  %v1246_v1 = vadd.f32 %v2559_v23, %v1207_v59  ;;  %v1591_v39 = vld [vmem:[%s1895_s21 + $0x171] sm:$0xff] }
  0x98   : > { %v1138_v2 = vmul.f32 %v2491_v43, %v1622_v10  ;;  %v665_v5 = vadd.f32 %v633_v27, %v563_v31  ;;  %v835_v6 = vmul.f32 %v2467_v51, %v1621_v46  ;;  %v463_v30 = vadd.f32 %v431_v25, %v330_v57  ;;  %v1559_v25 = vld [vmem:[%s1895_s21 + $0x180] sm:$0xff] }
  0x99   : > { %v1169_v58 = vadd.f32 %v1137_v33, %v1068_v32  ;;  %v968_v12 = vadd.f32 %v936_v45, %v866_v21  ;;  %v634_v48 = vmul.f32 %v2420_v0, %v1556_v36  ;;  %1278 = vst [vmem:[%s2058_s24 + $0xb8] sm:$0xff] %v1246_v1  ;;  %v937_v15 = vmul.f32 %v2428_v47, %v1557_v9  ;;  %v1624_v32 = vld [vmem:[%s1895_s21 + $0x172] sm:$0xff] }
  0x9a   : > { %v766_v19 = vadd.f32 %v734_v8, %v665_v5  ;;  %v1038_v62 = vmul.f32 %v2479_v60, %v1590_v34  ;;  %v735_v22 = vmul.f32 %v2438_v42, %v1589_v16  ;;  %v564_v49 = vadd.f32 %v532_v55, %v463_v30  ;;  %v1592_v55 = vld [vmem:[%s1895_s21 + $0x181] sm:$0xff] }
  0x9b   : > { %v1208_v14 = vmul.f32 %v2547_v37, %v1169_v58  ;;  %v1069_v4 = vadd.f32 %v1037_v35, %v968_v12  ;;  %v331_v24 = vmul.f32 %v2445_v13, %v2516_v17  ;;  %v1139_v52 = vmul.f32 %v2491_v43, %v1623_v26 }
  0x9c   : > { %v867_v61 = vadd.f32 %v835_v6, %v766_v19  ;;  %v432_v44 = vmul.f32 %v2452_v18, %v2519_v56  ;;  %v533_v54 = vmul.f32 %v2459_v11, %v1621_v46  ;;  %v666_v20 = vadd.f32 %v634_v48, %v564_v49 }
  0x9d   : > { %v1247_v29 = vadd.f32 %v2559_v23, %v1208_v14  ;;  %v1170_v40 = vadd.f32 %v1138_v2, %v1069_v4  ;;  %v836_v28 = vmul.f32 %v2467_v51, %v1622_v10  ;;  %v938_v50 = vmul.f32 %v2428_v47, %v1558_v53  ;;  %v1625_v4 = vld [vmem:[%s1895_s21 + $0x182] sm:$0xff] }
  0x9e   : > { %v969_v41 = vadd.f32 %v937_v15, %v867_v61  ;;  %v464_v17 = vadd.f32 %v432_v44, %v331_v24  ;;  %v635_v7 = vmul.f32 %v2420_v0, %v1557_v9  ;;  %v767_v46 = vadd.f32 %v735_v22, %v666_v20  ;;  %v1560_v44 = vld [vmem:[%s1895_s21 + $0x188] sm:$0xff] }
  0x9f   : > { %1279 = vst [vmem:[%s2058_s24 + $0xc0] sm:$0xff] %v1247_v29  ;;  %v1209_v56 = vmul.f32 %v2547_v37, %v1170_v40  ;;  %v1039_v33 = vmul.f32 %v2479_v60, %v1591_v39  ;;  %v736_v3 = vmul.f32 %v2438_v42, %v1590_v34  ;;  %v332_v63 = vmul.f32 %v2445_v13, %v1556_v36 }
  0xa0   : > { %v1070_v27 = vadd.f32 %v1038_v62, %v969_v41  ;;  %v565_v38 = vadd.f32 %v533_v54, %v464_v17  ;;  %v433_v45 = vmul.f32 %v2452_v18, %v1589_v16  ;;  %v868_v59 = vadd.f32 %v836_v28, %v767_v46  ;;  %v1593_v54 = vld [vmem:[%s1895_s21 + $0x189] sm:$0xff] }
  0xa1   : > { %v1248_v35 = vadd.f32 %v2559_v23, %v1209_v56  ;;  %v837_v31 = vmul.f32 %v2467_v51, %v1623_v26  ;;  %v534_v8 = vmul.f32 %v2459_v11, %v1622_v10  ;;  %v636_v2 = vmul.f32 %v2420_v0, %v1558_v53  ;;  %v1626_v46 = vld [vmem:[%s1895_s21 + $0x18a] sm:$0xff] }
  0xa2   : > { %v1171_v57 = vadd.f32 %v1139_v52, %v1070_v27  ;;  %v667_v21 = vadd.f32 %v635_v7, %v565_v38  ;;  %v465_v1 = vadd.f32 %v433_v45, %v332_v63  ;;  %v970_v36 = vadd.f32 %v938_v50, %v868_v59 }
  0xa3   : > { %1280 = vst [vmem:[%s2058_s24 + $0xc8] sm:$0xff] %v1248_v35  ;;  %v1140_v16 = vmul.f32 %v2491_v43, %v1624_v32  ;;  %v939_v5 = vmul.f32 %v2428_v47, %v1559_v25  ;;  %v1040_v6 = vmul.f32 %v2479_v60, %v1592_v55  ;;  %v737_v30 = vmul.f32 %v2438_v42, %v1591_v39 }
  0xa4   : > { %v1210_v10 = vmul.f32 %v2547_v37, %v1171_v57  ;;  %v768_v58 = vadd.f32 %v736_v3, %v667_v21  ;;  %v566_v12 = vadd.f32 %v534_v8, %v465_v1  ;;  %v1071_v48 = vadd.f32 %v1039_v33, %v970_v36  ;;  %v1561_v33 = vld [vmem:[%s1895_s21 + $0x198] sm:$0xff] }
  0xa5   : > { %v333_v19 = vmul.f32 %v2445_v13, %v1557_v9  ;;  %v434_v15 = vmul.f32 %v2452_v18, %v1590_v34  ;;  %v535_v62 = vmul.f32 %v2459_v11, %v1623_v26  ;;  %v838_v24 = vmul.f32 %v2467_v51, %v1624_v32 }
  0xa6   : > { %v1249_v22 = vadd.f32 %v2559_v23, %v1210_v10  ;;  %v869_v14 = vadd.f32 %v837_v31, %v768_v58  ;;  %v668_v49 = vadd.f32 %v636_v2, %v566_v12  ;;  %v1172_v61 = vadd.f32 %v1140_v16, %v1071_v48  ;;  %v1562_v2 = vld [vmem:[%s1895_s21 + $0x1a0] sm:$0xff] }
  0xa7   : > { %v1141_v52 = vmul.f32 %v2491_v43, %v1625_v4  ;;  %v466_v29 = vadd.f32 %v434_v15, %v333_v19  ;;  %v637_v9 = vmul.f32 %v2420_v0, %v1559_v25  ;;  %v940_v40 = vmul.f32 %v2428_v47, %v1560_v44  ;;  %v1595_v58 = vld [vmem:[%s1895_s21 + $0x1a1] sm:$0xff] }
  0xa8   : > { %1281 = vst [vmem:[%s2058_s24 + $0xd0] sm:$0xff] %v1249_v22  ;;  %v971_v34 = vadd.f32 %v939_v5, %v869_v14  ;;  %v769_v26 = vadd.f32 %v737_v30, %v668_v49  ;;  %v1041_v20 = vmul.f32 %v2479_v60, %v1593_v54  ;;  %v1211_v28 = vmul.f32 %v2547_v37, %v1172_v61  ;;  %v1628_v19 = vld [vmem:[%s1895_s21 + $0x1a2] sm:$0xff] }
  0xa9   : > { %v567_v41 = vadd.f32 %v535_v62, %v466_v29  ;;  %v738_v50 = vmul.f32 %v2438_v42, %v1592_v55  ;;  %v334_v17 = vmul.f32 %v2445_v13, %v1558_v53  ;;  %v435_v3 = vmul.f32 %v2452_v18, %v1591_v39  ;;  %v1594_v53 = vld [vmem:[%s1895_s21 + $0x199] sm:$0xff] }
  0xaa   : > { %v1072_v7 = vadd.f32 %v1040_v6, %v971_v34  ;;  %v870_v56 = vadd.f32 %v838_v24, %v769_v26  ;;  %v536_v27 = vmul.f32 %v2459_v11, %v1624_v32  ;;  %v1250_v38 = vadd.f32 %v2559_v23, %v1211_v28  ;;  %v1627_v32 = vld [vmem:[%s1895_s21 + $0x19a] sm:$0xff]  ;;  %s1637_s21 = sshll.u32 %s1777_s18, 12  ;;  %s1707_s18 = scalar_lea.vmem %s2659_s12, 4096 }
  0xab   : > { %v1142_v63 = vmul.f32 %v2491_v43, %v1626_v46  ;;  %v669_v45 = vadd.f32 %v637_v9, %v567_v41  ;;  %v839_v35 = vmul.f32 %v2467_v51, %v1625_v4  ;;  %v467_v31 = vadd.f32 %v435_v3, %v334_v17  ;;  %s2657_s22 = scalar_lea.hbm %s2715_s4, %s1637_s21  ;;  %p1708_p12 = scmp.ne.s32.totalorder %s2659_s12, %s1707_s18 }
  0xac   : > { %v1173_v59 = vadd.f32 %v1141_v52, %v1072_v7  ;;  %v972_v13 = vadd.f32 %v940_v40, %v870_v56  ;;  %v638_v8 = vmul.f32 %v2420_v0, %v1560_v44  ;;  %1282 = vst [vmem:[%s2058_s24 + $0xd8] sm:$0xff] %v1250_v38  ;;  %v941_v18 = vmul.f32 %v2428_v47, %v1561_v33  ;;  %p1715_p2 = scmp.lt.s32.totalorder %s1713_s30, %s1707_s18 }
  0xad   : > { %v770_v57 = vadd.f32 %v738_v50, %v669_v45  ;;  %v568_v21 = vadd.f32 %v536_v27, %v467_v31  ;;  %v739_v25 = vmul.f32 %v2438_v42, %v1593_v54  ;;  %v1042_v1 = vmul.f32 %v2479_v60, %v1594_v53  ;;  %p1709_p13 = pnand %p1708_p12, %p1855_p4 }
  0xae   : > { %v1212_v11 = vmul.f32 %v2547_v37, %v1173_v59  ;;  %v1073_v39 = vadd.f32 %v1041_v20, %v972_v13  ;;  %v840_v5 = vmul.f32 %v2467_v51, %v1626_v46  ;;  %v1143_v10 = vmul.f32 %v2491_v43, %v1627_v32  ;;  %p1716_p3 = por %p1715_p2, %p1714_p1 }
  0xaf   : > { %v871_v55 = vadd.f32 %v839_v35, %v770_v57  ;;  %v670_v16 = vadd.f32 %v638_v8, %v568_v21  ;;  %v942_v30 = vmul.f32 %v2428_v47, %v1562_v2  ;;  %v1043_v51 = vmul.f32 %v2479_v60, %v1595_v58  ;;  %p1710_p0 = pneg %p1709_p13 }
  0xb0   : > { %v1251_v0 = vadd.f32 %v2559_v23, %v1212_v11  ;;  %v1174_v36 = vadd.f32 %v1142_v63, %v1073_v39  ;;  %v1144_v4 = vmul.f32 %v2491_v43, %v1628_v19 }
  0xb1   : > { %v973_v6 = vadd.f32 %v941_v18, %v871_v55  ;;  %v771_v42 = vadd.f32 %v739_v25, %v670_v16  ;;  %p1717_p5 = pnand %p1716_p3, %p1710_p0 }
  0xb2   : > { %1283 = vst [vmem:[%s2058_s24 + $0xe0] sm:$0xff] %v1251_v0  ;;  %v1213_v12 = vmul.f32 %v2547_v37, %v1174_v36 }
  0xb3   : > { %v1074_v48 = vadd.f32 %v1042_v1, %v973_v6  ;;  %v872_v62 = vadd.f32 %v840_v5, %v771_v42 }
  0xb4   : > { %v1252_v15 = vadd.f32 %v2559_v23, %v1213_v12 }
  0xb5   : > { %v1175_v22 = vadd.f32 %v1143_v10, %v1074_v48  ;;  %v974_v14 = vadd.f32 %v942_v30, %v872_v62 }
  0xb6   : > { %1284 = vst [vmem:[%s2058_s24 + $0xe8] sm:$0xff] %v1252_v15 }
  0xb7   : > { %v1214_v49 = vmul.f32 %v2547_v37, %v1175_v22  ;;  %v1075_v24 = vadd.f32 %v1043_v51, %v974_v14 }
  0xb9   : > { %v1253_v47 = vadd.f32 %v2559_v23, %v1214_v49  ;;  %v1176_v61 = vadd.f32 %v1144_v4, %v1075_v24 }
  0xbb   : > { %1285 = vst [vmem:[%s2058_s24 + $0xf0] sm:$0xff] %v1253_v47  ;;  %v1215_v52 = vmul.f32 %v2547_v37, %v1176_v61 }
  0xbd   : > { %v1254_v60 = vadd.f32 %v2559_v23, %v1215_v52 }
  0xbf   : > { %1286 = vst [vmem:[%s2058_s24 + $0xf8] sm:$0xff] %v1254_v60 }
  0xc0   : > { %1720 = shalt.err (!%p1717_p5)
}
  0xc1   : > { %s1721_s10 = scalar_lea.hbm %s2657_s22, 4096  ;;  %s1725_s7 = scalar_lea.hbm %s2715_s4, 8192 }
  0xc2   : > { %p1722_p6 = scmp.ne.s32.totalorder %s2657_s22, %s1721_s10  ;;  %p1726_p10 = scmp.lt.u32.totalorder %s2657_s22, %s2715_s4 }
  0xc3   : > { %p1727_p11 = scmp.lt.u32.totalorder %s1725_s7, %s1721_s10  ;;  %p1729_p13 = scmp.lt.u32.totalorder %s1721_s10, %s2657_s22 }
  0xc4   : > { %p1723_p7 = pnand %p1722_p6, %p1855_p4 }
  0xc5   : > { %p1728_p12 = por %p1727_p11, %p1726_p10 }
  0xc6   : > { %p1724_p9 = pneg %p1723_p7 }
  0xc7   : > { %p1730_p0 = por %p1729_p13, %p1728_p12 }
  0xc9   : > { %p1731_p1 = pnand %p1730_p0, %p1724_p9 }
  0xcb   : > { %1734 = shalt.err (!%p1731_p1)
}
  0xcc   : > { %s1788_s11 = smov 128   ;;  %s1789_s21 = smov 8  }
  0xcd   : > { %1639 = dma.vmem_to_hbm [thread:$0]  (%p1855_p4), %s2659_s12, 4096, %s2657_s22, %s2665_s26, %s1788_s11, %s1788_s11, %s1789_s21  }
  0xce PF: > { %p1645_p2 = scmp.ge.s32.totalorder %s1785_s20, 2  ;;  %s1317_s13 = sand.u32 1, %s1765_s15  }
  0xcf   : > { %s1318_s14 = scalar_lea.sflag [#allocation3], %s1317_s13 }
  0xd0   : > { %p1642_p3 = pnand %p1645_p2, %p1862_p8 }
  0xd2   : > { %1760 = dma.done.wait (!%p1642_p3), %s1318_s14, 4096  }
  0xd3   : > { %1762 = vsyncadd (!%p1642_p3), %s1318_s14, 4294963200  ;;  %s17_s20 = sadd.s32 1, %s1785_s20   ;;  %s2718_s15 = smov %s1769_s16 }
  0xd4   : > { %p14_p5 = scmp.ge.s32.totalorder %s17_s20, 4   ;;  %s2719_s16 = smov %s1773_s17 }
  0xd5   : > { %s2720_s17 = smov %s1868_s28  ;;  %s2721_s18 = smov %s1781_s19 }
  0xd6   : > { %s2722_s19 = smov %s2724_s23  ;;  %16 = sbr.rel (!%p14_p5) target bundleno = 4 (0x4), region = 82 }
  0xdd   :  { %1323 = vsyncpa [#allocation3], 1 }
  0xde   :  { %1325 = vsyncpa [#allocation3 + $0x1], 1 }

</bundles_post_ra>
